<compile_context>
chip_gen: v7x
topology: tpu7x:2x2x1
jax: 0.10.0
libtpu: 0.0.40
codegen_flags: <defaults>
</compile_context>

<pallas_src>
import functools
import math

import jax
import jax.numpy as jnp
from jax.experimental import pallas as pl
from jax.experimental.pallas import tpu as pltpu


def _round_up(x, m):
    return ((x + m - 1) // m) * m


def _vmem_capacity_bytes():
    """Physical VMEM capacity of the current chip, with a conservative fallback."""
    try:
        info = pltpu.get_tpu_info()
        cap = getattr(info, "vmem_capacity_bytes", None)
        if cap:
            return int(cap)
    except Exception:
        pass
    return 64 * 1024 * 1024  # conservative (v7x per-TensorCore)


# ----------------------------------------------------------------------------
# Kernels
# ----------------------------------------------------------------------------
def _linear_kernel(x_ref, w_ref, b_ref, o_ref, *, precision):
    """Single-shot y = x @ W + b (whole K in one MXU pass)."""
    y = jnp.dot(
        x_ref[...],
        w_ref[...],
        preferred_element_type=jnp.float32,
        precision=precision,
    )
    o_ref[...] = (y + b_ref[...]).astype(o_ref.dtype)


def _linear_kernel_ktiled(x_ref, w_ref, b_ref, o_ref, acc_ref, *, precision):
    """K-tiled y = x @ W + b with an f32 VMEM accumulator (large input_dim)."""
    k = pl.program_id(1)

    @pl.when(k == 0)
    def _():
        acc_ref[...] = jnp.zeros_like(acc_ref)

    acc_ref[...] += jnp.dot(
        x_ref[...],
        w_ref[...],
        preferred_element_type=jnp.float32,
        precision=precision,
    )

    @pl.when(k == pl.num_programs(1) - 1)
    def _():
        o_ref[...] = (acc_ref[...] + b_ref[...]).astype(o_ref.dtype)


# ----------------------------------------------------------------------------
# Wrapper: VMEM-budget-aware tiling + pallas_call
# ----------------------------------------------------------------------------
def linear_pallas(
    x,
    w,
    b,
    *,
    precision=jax.lax.Precision.HIGHEST,
    vmem_budget_bytes=None,  # override for testing the K-tiled / tiny-tile path
):
    """y = x @ w + b in a single pallas_call.

    x: [B, Din]   w: [Din, Dout_pad]   b: [1, Dout_pad];  Dout_pad % 128 == 0.
    """
    B, Din = x.shape
    Dout = w.shape[1]
    assert Dout % 128 == 0, "class axis must be padded to a multiple of 128"

    itemsize = jnp.dtype(x.dtype).itemsize
    out_itemsize = 4  # f32 output / accumulator
    sublane = 8 if itemsize >= 4 else (16 if itemsize == 2 else 32)

    # --- VMEM budget ---------------------------------------------------------
    vmem_cap = _vmem_capacity_bytes()
    vmem_limit = int(vmem_cap * 0.8)  # scoped limit we hand to Mosaic
    budget = (
        int(vmem_budget_bytes)
        if vmem_budget_bytes is not None
        else int(vmem_limit * 0.75)  # headroom for compiler scratch / spills
    )

    # --- K (input_dim) tiling decision --------------------------------------
    weight_bytes = Din * Dout * itemsize
    k_tiled = (weight_bytes > budget // 2) and (Din % 128 == 0)
    if k_tiled:
        bk = 128
        cand = 256
        while cand <= Din:
            # double-buffered weight block must stay within ~1/3 of the budget
            if Din % cand == 0 and 2 * cand * Dout * itemsize <= budget // 3:
                bk = cand
            cand += 128
    else:
        bk = Din

    # --- batch tile from the remaining VMEM budget --------------------------
    if k_tiled:
        fixed = 2 * bk * Dout * itemsize + 2 * Dout * out_itemsize
    else:
        fixed = bk * Dout * itemsize + Dout * out_itemsize  # Buffered(1) resident
    per_row = 2 * bk * itemsize + 2 * Dout * out_itemsize  # x (2x) + out (2x)
    if k_tiled:
        per_row += Dout * out_itemsize  # f32 accumulator scratch

    avail = max(budget - fixed, per_row * sublane)
    bm_cap = max(sublane, (avail // per_row) // sublane * sublane)
    bm = min(_round_up(B, sublane), bm_cap, 4096)

    # v7x has 2 TensorCores: never leave one idle because the whole batch fit
    # in a single grid step.  (One extra ~0.35us step on 1-TC chips: negligible.)
    if B > sublane and _round_up(B, sublane) <= bm:
        bm = min(bm, _round_up(pl.cdiv(B, 2), sublane))

    nm = pl.cdiv(B, bm)

    cost = pl.CostEstimate(
        flops=2 * B * Din * Dout,
        transcendentals=0,
        bytes_accessed=int(
            (B * Din + Din * Dout + Dout) * itemsize + B * Dout * out_itemsize
        ),
    )

    def build(single_buffer_resident):
        if k_tiled:
            grid = (nm, Din // bk)
            in_specs = [
                pl.BlockSpec((bm, bk), lambda i, k: (i, k)),
                pl.BlockSpec((bk, Dout), lambda i, k: (k, 0)),
                pl.BlockSpec((1, Dout), lambda i, k: (0, 0)),
            ]
            out_specs = pl.BlockSpec((bm, Dout), lambda i, k: (i, 0))
            scratch = [pltpu.VMEM((bm, Dout), jnp.float32)]
            kernel = functools.partial(_linear_kernel_ktiled, precision=precision)
            dims = ("parallel", "arbitrary")
        else:
            grid = (nm,)
            extra = (
                dict(pipeline_mode=pl.Buffered(1)) if single_buffer_resident else {}
            )
            in_specs = [
                pl.BlockSpec((bm, Din), lambda i: (i, 0)),
                # Constant index_map -> weights/bias DMA'd once, resident in VMEM.
                pl.BlockSpec((Din, Dout), lambda i: (0, 0), **extra),
                pl.BlockSpec((1, Dout), lambda i: (0, 0), **extra),
            ]
            out_specs = pl.BlockSpec((bm, Dout), lambda i: (i, 0))
            scratch = []
            kernel = functools.partial(_linear_kernel, precision=precision)
            dims = ("parallel",)

        return pl.pallas_call(
            kernel,
            out_shape=jax.ShapeDtypeStruct((B, Dout), jnp.float32),
            grid_spec=pltpu.PrefetchScalarGridSpec(
                num_scalar_prefetch=0,
                grid=grid,
                in_specs=in_specs,
                out_specs=out_specs,
                scratch_shapes=scratch,
            ),
            compiler_params=pltpu.CompilerParams(
                dimension_semantics=dims,
                vmem_limit_bytes=vmem_limit,
            ),
            cost_estimate=cost,
        )

    if not k_tiled:
        try:
            return build(single_buffer_resident=True)(x, w, b)
        except Exception:
            # Fallback if this runtime rejects pipeline_mode=pl.Buffered(1).
            return build(single_buffer_resident=False)(x, w, b)
    return build(single_buffer_resident=False)(x, w, b)


# ----------------------------------------------------------------------------
# Classifier module (mirrors the PyTorch spec, incl. weights_init)
# ----------------------------------------------------------------------------
class Classifier:
    """fc = nn.Linear(input_dim, nclass); weight ~ xavier_uniform(gain=0.5), bias = 0."""

    def __init__(self, input_dim, nclass, key):
        self.input_dim = input_dim
        self.nclass = nclass
        # xavier_uniform_ with gain=0.5 (fan_in=input_dim, fan_out=nclass),
        # stored transposed as (input_dim, nclass) for x @ W.
        limit = 0.5 * math.sqrt(6.0 / (input_dim + nclass))
        w = jax.random.uniform(
            key, (input_dim, nclass), dtype=jnp.float32, minval=-limit, maxval=limit
        )
        b = jnp.zeros((1, nclass), jnp.float32)
        # Pad the class axis to a multiple of 128 ONCE at init (zero columns):
        # lane-dense output stores, and padded columns contribute exactly 0.
        self.nclass_pad = _round_up(nclass, 128)
        pad = self.nclass_pad - nclass
        self.w = jnp.pad(w, ((0, 0), (0, pad)))
        self.b = jnp.pad(b, ((0, 0), (0, pad)))

    def __call__(self, x, **kwargs):
        y = linear_pallas(x, self.w, self.b, **kwargs)
        return y[:, : self.nclass]


# ----------------------------------------------------------------------------
if __name__ == "__main__":
    key = jax.random.PRNGKey(0)
    k_model, k_x, k_x2 = jax.random.split(key, 3)

    batch = 8
    input_dim = 256
    nclass = 10  # classic small classifier head; internally padded to 128 lanes

    model = Classifier(input_dim, nclass, k_model)
    w_ref = model.w[:, :nclass]
    b_ref = model.b[:, :nclass]
    hi = jax.lax.Precision.HIGHEST

    # --- main path: whole-K kernel, VMEM-budget-sized batch tile -------------
    x = jax.random.normal(k_x, (batch, input_dim), dtype=jnp.float32)
    out = jax.block_until_ready(model(x))
    ref = jnp.dot(x, w_ref, precision=hi) + b_ref
    assert out.shape == (batch, nclass), f"bad shape {out.shape}"
    assert jnp.allclose(out, ref, atol=1e-5), "mismatch vs reference (main path)"

    # --- forced tiny VMEM budget: exercises the K-tiled accumulator path and
    #     a multi-step batch grid at small shapes --------------------------------
    x2 = jax.random.normal(k_x2, (32, input_dim), dtype=jnp.float32)
    out2 = jax.block_until_ready(model(x2, vmem_budget_bytes=128 * 1024))
    ref2 = jnp.dot(x2, w_ref, precision=hi) + b_ref
    assert out2.shape == (32, nclass), f"bad shape {out2.shape}"
    assert jnp.allclose(out2, ref2, atol=1e-5), "mismatch vs reference (K-tiled path)"

    print("KERNEL_OK")
</pallas_src>

<mosaic_0001>
module attributes {stable_mosaic.version = 11 : i64} {
  func.func @_linear_kernel(%arg0: i32, %arg1: memref<8x256xf32, #tpu.memory_space<vmem>>, %arg2: memref<256x128xf32, #tpu.memory_space<vmem>>, %arg3: memref<1x128xf32, #tpu.memory_space<vmem>>, %arg4: memref<8x128xf32, #tpu.memory_space<vmem>>) attributes {dimension_semantics = [#tpu.dimension_semantics<parallel>], iteration_bounds = array<i64: 1>, scalar_prefetch = 0 : i64, scratch_operands = 0 : i64, tpu.core_type = #tpu.core_type<tc>, window_params = [{transform_indices = @transform_0, window_bounds = array<i64: 8, 256>}, {pipeline_mode = #tpu.pipeline_mode<synchronous>, transform_indices = @transform_1, window_bounds = array<i64: 256, 128>}, {pipeline_mode = #tpu.pipeline_mode<synchronous>, transform_indices = @transform_2, window_bounds = array<i64: 1, 128>}, {transform_indices = @transform_3, window_bounds = array<i64: 8, 128>}]} {
    %c0 = arith.constant 0 : index
    %c0_0 = arith.constant 0 : index
    %0 = vector.load %arg1[%c0, %c0_0] : memref<8x256xf32, #tpu.memory_space<vmem>>, vector<8x256xf32>
    %c0_1 = arith.constant 0 : index
    %c0_2 = arith.constant 0 : index
    %1 = vector.load %arg2[%c0_1, %c0_2] : memref<256x128xf32, #tpu.memory_space<vmem>>, vector<256x128xf32>
    %cst = arith.constant dense<0.000000e+00> : vector<8x128xf32>
    %2 = tpu.matmul %0, %1, %cst {dimension_numbers = #tpu.dot_dimension_numbers<[1], [0], [0], [1], [0, 0, 1, 1], [], []>, precision = #tpu.contract_precision<fp32>} : vector<8x256xf32>, vector<256x128xf32>, vector<8x128xf32> -> vector<8x128xf32>
    %c0_3 = arith.constant 0 : index
    %c0_4 = arith.constant 0 : index
    %3 = vector.load %arg3[%c0_3, %c0_4] : memref<1x128xf32, #tpu.memory_space<vmem>>, vector<1x128xf32>
    %4 = vector.broadcast %3 : vector<1x128xf32> to vector<8x128xf32>
    %5 = arith.addf %2, %4 : vector<8x128xf32>
    %c0_5 = arith.constant 0 : index
    %c0_6 = arith.constant 0 : index
    %6 = vector.load %arg4[%c0_5, %c0_6] : memref<8x128xf32, #tpu.memory_space<vmem>>, vector<8x128xf32>
    tpu.vector_store %arg4[%c0_5, %c0_6], %5 {strides = array<i32>} : memref<8x128xf32, #tpu.memory_space<vmem>>, vector<8x128xf32>,
    return
  }
  func.func @transform_0(%arg0: i32) -> (i32, i32) {
    %c0_i32 = arith.constant 0 : i32
    %c0_i32_0 = arith.constant 0 : i32
    return %arg0, %c0_i32 : i32, i32
  }
  func.func @transform_1(%arg0: i32) -> (i32, i32) {
    %c0_i32 = arith.constant 0 : i32
    %c0_i32_0 = arith.constant 0 : i32
    %c0_i32_1 = arith.constant 0 : i32
    return %c0_i32, %c0_i32_0 : i32, i32
  }
  func.func @transform_2(%arg0: i32) -> (i32, i32) {
    %c0_i32 = arith.constant 0 : i32
    %c0_i32_0 = arith.constant 0 : i32
    %c0_i32_1 = arith.constant 0 : i32
    return %c0_i32, %c0_i32_0 : i32, i32
  }
  func.func @transform_3(%arg0: i32) -> (i32, i32) {
    %c0_i32 = arith.constant 0 : i32
    %c0_i32_0 = arith.constant 0 : i32
    return %arg0, %c0_i32 : i32, i32
  }
}

module attributes {stable_mosaic.version = 11 : i64} {
  func.func @_linear_kernel(%arg0: i32, %arg1: memref<8x256xf32, #tpu.memory_space<vmem>>, %arg2: memref<256x128xf32, #tpu.memory_space<vmem>>, %arg3: memref<1x128xf32, #tpu.memory_space<vmem>>, %arg4: memref<8x128xf32, #tpu.memory_space<vmem>>) attributes {dimension_semantics = [#tpu.dimension_semantics<parallel>], iteration_bounds = array<i64: 1>, scalar_prefetch = 0 : i64, scratch_operands = 0 : i64, tpu.core_type = #tpu.core_type<tc>, window_params = [{transform_indices = @transform_0, window_bounds = array<i64: 8, 256>}, {pipeline_mode = #tpu.pipeline_mode<synchronous>, transform_indices = @transform_1, window_bounds = array<i64: 256, 128>}, {pipeline_mode = #tpu.pipeline_mode<synchronous>, transform_indices = @transform_2, window_bounds = array<i64: 1, 128>}, {transform_indices = @transform_3, window_bounds = array<i64: 8, 128>}]} {
    %c0 = arith.constant 0 : index
    %c0_0 = arith.constant 0 : index
    %0 = vector.load %arg1[%c0, %c0_0] : memref<8x256xf32, #tpu.memory_space<vmem>>, vector<8x256xf32>
    %c0_1 = arith.constant 0 : index
    %c0_2 = arith.constant 0 : index
    %1 = vector.load %arg2[%c0_1, %c0_2] : memref<256x128xf32, #tpu.memory_space<vmem>>, vector<256x128xf32>
    %cst = arith.constant dense<0.000000e+00> : vector<8x128xf32>
    %2 = tpu.matmul %0, %1, %cst {dimension_numbers = #tpu.dot_dimension_numbers<[1], [0], [0], [1], [0, 0, 1, 1], [], []>, precision = #tpu.contract_precision<fp32>} : vector<8x256xf32>, vector<256x128xf32>, vector<8x128xf32> -> vector<8x128xf32>
    %c0_3 = arith.constant 0 : index
    %c0_4 = arith.constant 0 : index
    %3 = vector.load %arg3[%c0_3, %c0_4] : memref<1x128xf32, #tpu.memory_space<vmem>>, vector<1x128xf32>
    %4 = vector.broadcast %3 : vector<1x128xf32> to vector<8x128xf32>
    %5 = arith.addf %2, %4 : vector<8x128xf32>
    %c0_5 = arith.constant 0 : index
    %c0_6 = arith.constant 0 : index
    %6 = vector.load %arg4[%c0_5, %c0_6] : memref<8x128xf32, #tpu.memory_space<vmem>>, vector<8x128xf32>
    tpu.vector_store %arg4[%c0_5, %c0_6], %5 {strides = array<i32>} : memref<8x128xf32, #tpu.memory_space<vmem>>, vector<8x128xf32>,
    return
  }
  func.func @transform_0(%arg0: i32) -> (i32, i32) {
    %c0_i32 = arith.constant 0 : i32
    %c0_i32_0 = arith.constant 0 : i32
    return %arg0, %c0_i32 : i32, i32
  }
  func.func @transform_1(%arg0: i32) -> (i32, i32) {
    %c0_i32 = arith.constant 0 : i32
    %c0_i32_0 = arith.constant 0 : i32
    %c0_i32_1 = arith.constant 0 : i32
    return %c0_i32, %c0_i32_0 : i32, i32
  }
  func.func @transform_2(%arg0: i32) -> (i32, i32) {
    %c0_i32 = arith.constant 0 : i32
    %c0_i32_0 = arith.constant 0 : i32
    %c0_i32_1 = arith.constant 0 : i32
    return %c0_i32, %c0_i32_0 : i32, i32
  }
  func.func @transform_3(%arg0: i32) -> (i32, i32) {
    %c0_i32 = arith.constant 0 : i32
    %c0_i32_0 = arith.constant 0 : i32
    return %arg0, %c0_i32 : i32, i32
  }
}

</mosaic_0001>

<bundles_post_ra>
// kernel: tpu_custom_call.1
= control target key start
LH: loop header
LB: loop body
LE: loop exit
PB: predicated region body
PF: predicated region fallthrough
CT: control target
= control target key end

     0   :  { %8 = vsyncpa [#allocation3], 0  ;;  %s1910_s0 = inlined_call_operand.hbm [shape: f32[8,256], index: 0, kind: input, shape index: {}]   ;;  %s1911_s1 = inlined_call_operand.hbm [shape: f32[256,128], index: 1, kind: input, shape index: {}]   ;;  %s1912_s2 = inlined_call_operand.vmem [shape: f32[1,128], index: 2, kind: input, shape index: {}]   ;;  %s1913_s3 = inlined_call_operand.hbm [shape: f32[8,128], index: 3, kind: output, shape index: {}]  }
   0x1   :  { %9 = vsyncpa [#allocation6], 0 }
   0x2   :  { %10 = vsyncpa [#allocation4], 0  ;;  %s1441_s12 = smov [#allocation2]   ;;  %s1442_s14 = smov [#allocation5]  }
   0x3   :  { %s17_s13 = sshll.u32 %s1441_s12, 4  ;;  %s26_s15 = sshll.u32 %s1442_s14, 4  ;;  %s18_s13 = int_to_ptr.vmem [resolvable:$true] %s17_s13  ;;  %s1466_s15 = int_to_ptr.vmem [resolvable:$true] %s26_s15 }
   0x4   :  { %s1369_s18 = scalar_lea.hbm %s1910_s0, 256 }
   0x5   :  { %p1370_p0 = scmp.ne.s32.totalorder %s1910_s0, %s1369_s18  ;;  %p1373_p1 = scmp.lt.u32.totalorder %s1369_s18, %s1910_s0 }
   0x7   :  { %p1375_p2 = pnand %p1373_p1, %p1370_p0 }
   0x9   :  { %1378 = shalt.err (!%p1375_p2)
}
   0xa   :  { %s1379_s23 = scalar_lea.vmem %s18_s13, 256  ;;  %p1384_p4 = scmp.lt.s32.totalorder %s18_s13, %s18_s13 }
   0xb   :  { %p1380_p3 = scmp.ne.s32.totalorder %s18_s13, %s1379_s23  ;;  %p1385_p5 = scmp.lt.s32.totalorder %s1379_s23, %s1379_s23 }
   0xd   :  { %p1386_p6 = por %p1385_p5, %p1384_p4 }
   0xf   :  { %p1387_p7 = pnand %p1386_p6, %p1380_p3 }
  0x11   :  { %1390 = shalt.err (!%p1387_p7)
}
  0x12   :  { %20 = dma.hbm_to_vmem [thread:$0]  %s1910_s0, 256, %s18_s13, [#allocation3]  }
  0x13   :  { %s1391_s28 = scalar_lea.hbm %s1911_s1, 4096 }
  0x14   :  { %p1392_p8 = scmp.ne.s32.totalorder %s1911_s1, %s1391_s28  ;;  %p1395_p9 = scmp.lt.u32.totalorder %s1391_s28, %s1911_s1 }
  0x16   :  { %p1397_p10 = pnand %p1395_p9, %p1392_p8 }
  0x18   :  { %1400 = shalt.err (!%p1397_p10)
}
  0x19   :  { %s1401_s6 = scalar_lea.vmem %s1466_s15, 4096  ;;  %p1406_p12 = scmp.lt.s32.totalorder %s1466_s15, %s1466_s15 }
  0x1a   :  { %p1402_p11 = scmp.ne.s32.totalorder %s1466_s15, %s1401_s6  ;;  %p1407_p13 = scmp.lt.s32.totalorder %s1401_s6, %s1401_s6 }
  0x1c   :  { %p1408_p0 = por %p1407_p13, %p1406_p12 }
  0x1e   :  { %p1409_p1 = pnand %p1408_p0, %p1402_p11 }
  0x20   :  { %1412 = shalt.err (!%p1409_p1)
}
  0x21   :  { %s1443_s0 = smov 128   ;;  %s1444_s7 = smov 8  }
  0x22   :  { %32 = dma.hbm_to_vmem [thread:$0]  %s1911_s1, 4096, %s1466_s15, [#allocation6], %s1443_s0, %s1443_s0, %s1444_s7  }
  0x23   :  { %1435 = dma.done.wait [#allocation3], 256  }
  0x24   :  { %1436 = vsyncadd [#allocation3], 4294967040 }
  0x25   :  { %1437 = dma.done.wait [#allocation6], 4096  }
  0x26   :  { %1438 = vsyncadd [#allocation6], 4294963200  ;;  %v59_v0 = vld [vmem:[#allocation5 + $0x80] sm:$0xff]  ;;  %v60_v1 = vld [vmem:[#allocation5 + $0x88] sm:$0xff] }
  0x27   :  { %v43_v2 = vld [vmem:[#allocation5] sm:$0xff]  ;;  %v131_v3 = vand.u32 4294901760, %v59_v0  ;;  %v134_v4 = vand.u32 4294901760, %v60_v1  ;;  %v44_v5 = vld [vmem:[#allocation5 + $0x8] sm:$0xff]  ;;  %v61_v7 = vld [vmem:[#allocation5 + $0x90] sm:$0xff] }
  0x28   :  { %v83_v6 = vand.u32 4294901760, %v43_v2  ;;  %v62_v8 = vld [vmem:[#allocation5 + $0x98] sm:$0xff]  ;;  %v86_v9 = vand.u32 4294901760, %v44_v5  ;;  %v137_v10 = vand.u32 4294901760, %v61_v7  ;;  %v45_v12 = vld [vmem:[#allocation5 + $0x10] sm:$0xff]  ;;  %v63_v18 = vld [vmem:[#allocation5 + $0xa0] sm:$0xff] }
  0x29   :  { %v140_v11 = vand.u32 4294901760, %v62_v8  ;;  %v46_v13 = vld [vmem:[#allocation5 + $0x18] sm:$0xff]  ;;  %v1497_v14 = vpack.c.bf16 %v134_v4, %v131_v3  ;;  %v89_v16 = vand.u32 4294901760, %v45_v12  ;;  %v64_v19 = vld [vmem:[#allocation5 + $0xa8] sm:$0xff]  ;;  %v47_v23 = vld [vmem:[#allocation5 + $0x20] sm:$0xff]  ;;  %v143_v29 = vand.u32 4294901760, %v63_v18 }
  0x2a   :  { %v1499_v15 = vsub.f32 %v43_v2, %v83_v6  ;;  %v92_v17 = vand.u32 4294901760, %v46_v13  ;;  %v1501_v20 = vpack.c.bf16 %v86_v9, %v83_v6  ;;  %v1503_v21 = vsub.f32 %v44_v5, %v86_v9  ;;  %v48_v24 = vld [vmem:[#allocation5 + $0x28] sm:$0xff]  ;;  %v65_v37 = vld [vmem:[#allocation5 + $0xb0] sm:$0xff]  ;;  %v66_v42 = vld [vmem:[#allocation5 + $0xb8] sm:$0xff] }
  0x2b   :  { %v1505_v22 = vpack.c.bf16 %v140_v11, %v137_v10  ;;  %1173 = vmatprep.subr.bf16.mxu0 %v1497_v14  ;;  %v1508_v25 = vsub.f32 %v61_v7, %v137_v10  ;;  %v1510_v26 = vsub.f32 %v62_v8, %v140_v11  ;;  %v1514_v28 = vsub.f32 %v45_v12, %v89_v16  ;;  %v49_v55 = vld [vmem:[#allocation5 + $0x30] sm:$0xff]  ;;  %v50_v56 = vld [vmem:[#allocation5 + $0x38] sm:$0xff]  ;;  %v67_v5 = vld [vmem:[#allocation5 + $0xc0] sm:$0xff] }
  0x2c   :  { %v1512_v27 = vpack.c.bf16 %v92_v17, %v89_v16  ;;  %1175 = vmatpush3.bf16.msra.mxu0 %v1501_v20  ;;  %v146_v30 = vand.u32 4294901760, %v64_v19  ;;  %v1517_v31 = vsub.f32 %v59_v0, %v131_v3  ;;  %v1519_v32 = vsub.f32 %v60_v1, %v134_v4  ;;  %v68_v6 = vld [vmem:[#allocation5 + $0xc8] sm:$0xff]  ;;  %v51_v11 = vld [vmem:[#allocation5 + $0x40] sm:$0xff] }
  0x2d   :  { %1177 = vmatprep.subr.bf16.mxu0 %v1505_v22  ;;  %v95_v33 = vand.u32 4294901760, %v47_v23  ;;  %v98_v34 = vand.u32 4294901760, %v48_v24  ;;  %v1929_v35 = vand.u32 4294901760, %v1499_v15  ;;  %v1928_v36 = vand.u32 4294901760, %v1503_v21 }
  0x2e   :  { %v1524_v38 = vsub.f32 %v46_v13, %v92_v17  ;;  %v1526_v39 = vpack.c.bf16 %v146_v30, %v143_v29  ;;  %v1528_v40 = vsub.f32 %v63_v18, %v143_v29  ;;  %v1933_v41 = vand.u32 4294901760, %v1517_v31  ;;  %v52_v29 = vld [vmem:[#allocation5 + $0x48] sm:$0xff] }
  0x2f   :  { %v1531_v43 = vsub.f32 %v64_v19, %v146_v30  ;;  %v1931_v44 = vand.u32 4294901760, %v1519_v32  ;;  %v1534_v45 = vpack.c.bf16 %v98_v34, %v95_v33  ;;  %v1536_v46 = vsub.f32 %v47_v23, %v95_v33 }
  0x30   :  { %1179 = vmatpush3.bf16.msra.mxu0 %v1512_v27  ;;  %v310_v47 = vsub.f32 %v1517_v31, %v1933_v41  ;;  %v198_v48 = vsub.f32 %v1499_v15, %v1929_v35  ;;  %v205_v49 = vsub.f32 %v1503_v21, %v1928_v36  ;;  %v149_v50 = vand.u32 4294901760, %v65_v37  ;;  %v42_v41 = vld [vmem:[#allocation2 + $0x8] sm:$0xff] }
  0x31   :  { %1181 = vmatprep.subr.bf16.mxu0 %v1526_v39  ;;  %v317_v51 = vsub.f32 %v1519_v32, %v1931_v44  ;;  %v152_v52 = vand.u32 4294901760, %v66_v42  ;;  %v1926_v53 = vand.u32 4294901760, %v1508_v25  ;;  %v1924_v54 = vand.u32 4294901760, %v1510_v26 }
  0x32   :  { %v311_v57 = vand.u32 4294901760, %v310_v47  ;;  %v1554_v58 = vsub.f32 %v48_v24, %v98_v34  ;;  %v199_v59 = vand.u32 4294901760, %v198_v48  ;;  %v206_v60 = vand.u32 4294901760, %v205_v49 }
  0x33   :  { %v318_v61 = vand.u32 4294901760, %v317_v51  ;;  %v1556_v62 = vpack.c.bf16 %v152_v52, %v149_v50  ;;  %v1558_v63 = vsub.f32 %v65_v37, %v149_v50  ;;  %v324_v0 = vsub.f32 %v1508_v25, %v1926_v53 }
  0x34   :  { %1183 = vmatpush3.bf16.msra.mxu0 %v1534_v45  ;;  %v1206_v1 = vpack.c.bf16 %v206_v60, %v199_v59  ;;  %v331_v2 = vsub.f32 %v1510_v26, %v1924_v54  ;;  %v101_v3 = vand.u32 4294901760, %v49_v55  ;;  %v104_v4 = vand.u32 4294901760, %v50_v56  ;;  %v70_v59 = vld [vmem:[#allocation5 + $0xd8] sm:$0xff] }
  0x35   :  { %v1204_v7 = vpack.c.bf16 %v318_v61, %v311_v57  ;;  %1185 = vmatprep.subr.bf16.mxu0 %v1556_v62  ;;  %v325_v8 = vand.u32 4294901760, %v324_v0  ;;  %v1923_v9 = vand.u32 4294901760, %v1514_v28  ;;  %v1921_v10 = vand.u32 4294901760, %v1524_v38  ;;  %v69_v57 = vld [vmem:[#allocation5 + $0xd0] sm:$0xff]  ;;  %v74_v54 = vld [vmem:[#allocation5 + $0xf8] sm:$0xff] }
  0x36   :  { %v1570_v12 = vsub.f32 %v66_v42, %v152_v52  ;;  %v332_v13 = vand.u32 4294901760, %v331_v2  ;;  %v1572_v16 = vpack.c.bf16 %v104_v4, %v101_v3  ;;  %v1574_v17 = vsub.f32 %v49_v55, %v101_v3 }
  0x37   :  { %1205 = vmatprep.subr.bf16.mxu1 %v1204_v7  ;;  %v212_v18 = vsub.f32 %v1514_v28, %v1923_v9  ;;  %v219_v19 = vsub.f32 %v1524_v38, %v1921_v10  ;;  %v155_v23 = vand.u32 4294901760, %v67_v5  ;;  %v158_v24 = vand.u32 4294901760, %v68_v6  ;;  %v73_v9 = vld [vmem:[#allocation5 + $0xf0] sm:$0xff] }
  0x38   :  { %1207 = vmatpush3.bf16.msra.mxu1 %v1206_v1  ;;  %v1208_v30 = vpack.c.bf16 %v332_v13, %v325_v8  ;;  %1187 = vmatpush3.bf16.msra.mxu0 %v1572_v16  ;;  %v1919_v33 = vand.u32 4294901760, %v1528_v40  ;;  %v1918_v34 = vand.u32 4294901760, %v1531_v43  ;;  %v107_v37 = vand.u32 4294901760, %v51_v11  ;;  %v53_v1 = vld [vmem:[#allocation5 + $0x50] sm:$0xff] }
  0x39   :  { %v1585_v42 = vsub.f32 %v50_v56, %v104_v4  ;;  %v213_v47 = vand.u32 4294901760, %v212_v18  ;;  %v220_v48 = vand.u32 4294901760, %v219_v19  ;;  %v1587_v49 = vpack.c.bf16 %v158_v24, %v155_v23  ;;  %v54_v18 = vld [vmem:[#allocation5 + $0x58] sm:$0xff] }
  0x3a   :  { %1209 = vmatprep.subr.bf16.mxu1 %v1208_v30  ;;  %v1589_v50 = vsub.f32 %v67_v5, %v155_v23  ;;  %v338_v51 = vsub.f32 %v1528_v40, %v1919_v33  ;;  %v345_v52 = vsub.f32 %v1531_v43, %v1918_v34  ;;  %v110_v55 = vand.u32 4294901760, %v52_v29 }
  0x3b   :  { %v1210_v56 = vpack.c.bf16 %v220_v48, %v213_v47  ;;  %1189 = vmatprep.subr.bf16.mxu0 %v1587_v49  ;;  %v1598_v60 = vsub.f32 %v68_v6, %v158_v24  ;;  %v1916_v61 = vand.u32 4294901760, %v1536_v46  ;;  %v1914_v0 = vand.u32 4294901760, %v1554_v58 }
  0x3c   :  { %v339_v2 = vand.u32 4294901760, %v338_v51  ;;  %v346_v3 = vand.u32 4294901760, %v345_v52  ;;  %v1602_v4 = vpack.c.bf16 %v110_v55, %v107_v37  ;;  %v1604_v5 = vsub.f32 %v51_v11, %v107_v37 }
  0x3d   :  { %1211 = vmatpush3.bf16.msra.mxu1 %v1210_v56  ;;  %v226_v7 = vsub.f32 %v1536_v46, %v1916_v61  ;;  %v233_v6 = vsub.f32 %v1554_v58, %v1914_v0  ;;  %v161_v8 = vand.u32 4294901760, %v69_v57  ;;  %v164_v13 = vand.u32 4294901760, %v70_v59  ;;  %v72_v0 = vld [vmem:[#allocation5 + $0xe8] sm:$0xff] }
  0x3e   :  { %v1212_v19 = vpack.c.bf16 %v346_v3, %v339_v2  ;;  %1191 = vmatpush3.bf16.msra.mxu0 %v1602_v4  ;;  %v1915_v23 = vand.u32 4294901760, %v1558_v63  ;;  %v1917_v11 = vand.u32 4294901760, %v1570_v12  ;;  %v113_v24 = vand.u32 4294901760, %v53_v1  ;;  %v71_v3 = vld [vmem:[#allocation5 + $0xe0] sm:$0xff] }
  0x3f   :  { %v1615_v30 = vsub.f32 %v52_v29, %v110_v55  ;;  %v227_v37 = vand.u32 4294901760, %v226_v7  ;;  %v234_v47 = vand.u32 4294901760, %v233_v6  ;;  %v1617_v48 = vpack.c.bf16 %v164_v13, %v161_v8  ;;  %v55_v6 = vld [vmem:[#allocation5 + $0x60] sm:$0xff] }
  0x40   :  { %1213 = vmatprep.subr.bf16.mxu1 %v1212_v19  ;;  %v1619_v51 = vsub.f32 %v69_v57, %v161_v8  ;;  %v352_v52 = vsub.f32 %v1558_v63, %v1915_v23  ;;  %v359_v56 = vsub.f32 %v1570_v12, %v1917_v11  ;;  %v116_v2 = vand.u32 4294901760, %v54_v18  ;;  %v56_v11 = vld [vmem:[#allocation5 + $0x68] sm:$0xff] }
  0x41   :  { %v1214_v29 = vpack.c.bf16 %v234_v47, %v227_v37  ;;  %1193 = vmatprep.subr.bf16.mxu0 %v1617_v48  ;;  %v1628_v55 = vsub.f32 %v70_v59, %v164_v13  ;;  %v1920_v7 = vand.u32 4294901760, %v1574_v17  ;;  %v1922_v57 = vand.u32 4294901760, %v1585_v42 }
  0x42   :  { %v353_v8 = vand.u32 4294901760, %v352_v52  ;;  %v360_v19 = vand.u32 4294901760, %v359_v56  ;;  %v1632_v23 = vpack.c.bf16 %v116_v2, %v113_v24  ;;  %v1634_v61 = vsub.f32 %v53_v1, %v113_v24 }
  0x43   :  { %1215 = vmatpush3.bf16.msra.mxu1 %v1214_v29  ;;  %v240_v37 = vsub.f32 %v1574_v17, %v1920_v7  ;;  %v247_v59 = vsub.f32 %v1585_v42, %v1922_v57  ;;  %v167_v13 = vand.u32 4294901760, %v71_v3  ;;  %v170_v47 = vand.u32 4294901760, %v72_v0 }
  0x44   :  { %1959 = vst [vmem:[#allocation11_spill] sm:$0xff] %v1632_v23  ;;  %v1216_v34 = vpack.c.bf16 %v360_v19, %v353_v8  ;;  %1195 = vmatpush3.bf16.msra.mxu0 %v1632_v23  ;;  %v1925_v52 = vand.u32 4294901760, %v1589_v50  ;;  %v1927_v1 = vand.u32 4294901760, %v1598_v60  ;;  %v119_v24 = vand.u32 4294901760, %v55_v6 }
  0x45   :  { %v1645_v56 = vsub.f32 %v54_v18, %v116_v2  ;;  %v241_v29 = vand.u32 4294901760, %v240_v37  ;;  %v248_v33 = vand.u32 4294901760, %v247_v59  ;;  %v1647_v7 = vpack.c.bf16 %v170_v47, %v167_v13  ;;  %v57_v37 = vld [vmem:[#allocation5 + $0x70] sm:$0xff] }
  0x46   :  { %1217 = vmatprep.subr.bf16.mxu1 %v1216_v34  ;;  %v1649_v10 = vsub.f32 %v71_v3, %v167_v13  ;;  %v366_v8 = vsub.f32 %v1589_v50, %v1925_v52  ;;  %v373_v19 = vsub.f32 %v1598_v60, %v1927_v1  ;;  %v122_v57 = vand.u32 4294901760, %v56_v11  ;;  %v58_v1 = vld [vmem:[#allocation5 + $0x78] sm:$0xff] }
  0x47   :  { %1960 = vst [vmem:[#allocation12_spill] sm:$0xff] %v1647_v7  ;;  %v1218_v18 = vpack.c.bf16 %v248_v33, %v241_v29  ;;  %1197 = vmatprep.subr.bf16.mxu0 %v1647_v7  ;;  %v1658_v2 = vsub.f32 %v72_v0, %v170_v47  ;;  %v1930_v34 = vand.u32 4294901760, %v1604_v5  ;;  %v1932_v3 = vand.u32 4294901760, %v1615_v30 }
  0x48   :  { %v367_v59 = vand.u32 4294901760, %v366_v8  ;;  %v374_v13 = vand.u32 4294901760, %v373_v19  ;;  %v1662_v52 = vpack.c.bf16 %v122_v57, %v119_v24  ;;  %v1664_v53 = vsub.f32 %v55_v6, %v119_v24 }
  0x49   :  { %1219 = vmatpush3.bf16.msra.mxu1 %v1218_v18  ;;  %v254_v33 = vsub.f32 %v1604_v5, %v1930_v34  ;;  %v261_v0 = vsub.f32 %v1615_v30, %v1932_v3  ;;  %v173_v47 = vand.u32 4294901760, %v73_v9  ;;  %v176_v29 = vand.u32 4294901760, %v74_v54 }
  0x4a   :  { %1961 = vst [vmem:[#allocation13_spill] sm:$0xff] %v1662_v52  ;;  %v1220_v36 = vpack.c.bf16 %v374_v13, %v367_v59  ;;  %1199 = vmatpush3.bf16.msra.mxu0 %v1662_v52  ;;  %v1936_v8 = vand.u32 4294901760, %v1619_v51  ;;  %v1937_v6 = vand.u32 4294901760, %v1628_v55  ;;  %v125_v24 = vand.u32 4294901760, %v57_v37 }
  0x4b   :  { %v1675_v19 = vsub.f32 %v56_v11, %v122_v57  ;;  %v255_v18 = vand.u32 4294901760, %v254_v33  ;;  %v262_v35 = vand.u32 4294901760, %v261_v0  ;;  %v1677_v34 = vpack.c.bf16 %v176_v29, %v173_v47 }
  0x4c   :  { %1221 = vmatprep.subr.bf16.mxu1 %v1220_v36  ;;  %v1679_v44 = vsub.f32 %v73_v9, %v173_v47  ;;  %v380_v59 = vsub.f32 %v1619_v51, %v1936_v8  ;;  %v387_v13 = vsub.f32 %v1628_v55, %v1937_v6  ;;  %v128_v3 = vand.u32 4294901760, %v58_v1  ;;  %v41_v9 = vld [vmem:[#allocation2] sm:$0xff] }
  0x4d   :  { %1962 = vst [vmem:[#allocation14_spill] sm:$0xff] %v1677_v34  ;;  %v1222_v52 = vpack.c.bf16 %v262_v35, %v255_v18  ;;  %1201 = vmatprep.subr.bf16.mxu0 %v1677_v34  ;;  %v1688_v11 = vsub.f32 %v74_v54, %v176_v29  ;;  %v1938_v57 = vand.u32 4294901760, %v1634_v61  ;;  %v1939_v36 = vand.u32 4294901760, %v1645_v56 }
  0x4e   :  { %v381_v33 = vand.u32 4294901760, %v380_v59  ;;  %v388_v0 = vand.u32 4294901760, %v387_v13  ;;  %v1692_v47 = vpack.c.bf16 %v128_v3, %v125_v24  ;;  %v1694_v8 = vsub.f32 %v57_v37, %v125_v24 }
  0x4f   :  { %1223 = vmatpush3.bf16.msra.mxu1 %v1222_v52  ;;  %v268_v35 = vsub.f32 %v1634_v61, %v1938_v57  ;;  %v275_v54 = vsub.f32 %v1645_v56, %v1939_v36  ;;  %v1702_v29 = vand.u32 4294901760, %v42_v41  ;;  %v1942_v18 = vand.u32 4294901760, %v1649_v10 }
  0x50   :  { %1963 = vst [vmem:[#allocation15_spill] sm:$0xff] %v1692_v47  ;;  %v1224_v6 = vpack.c.bf16 %v388_v0, %v381_v33  ;;  %1203 = vmatpush3.bf16.msra.mxu0 %v1692_v47  ;;  %v1948_v59 = vand.u32 4294901760, %v1658_v2  ;;  %v1236_v52 = vpack.c.bf16 %v1519_v32, %v1517_v31  ;;  %v1709_v37 = vand.u32 4294901760, %v41_v9 }
  0x51   :  { %1964 = vst [vmem:[#allocation16_spill] sm:$0xff] %v1702_v29  ;;  %v269_v24 = vand.u32 4294901760, %v268_v35  ;;  %v276_v13 = vand.u32 4294901760, %v275_v54  ;;  %v1712_v57 = vsub.f32 %v42_v41, %v1702_v29  ;;  %v394_v36 = vsub.f32 %v1649_v10, %v1942_v18  ;;  %419 = vmatprep.mubr.f32.mxu1 %v1702_v29 }
  0x52   :  { %1225 = vmatprep.subr.bf16.mxu1 %v1224_v6  ;;  %v401_v33 = vsub.f32 %v1658_v2, %v1948_v59  ;;  %1237 = vmatprep.subr.bf16.mxu0 %v1236_v52  ;;  %v1722_v0 = vsub.f32 %v41_v9, %v1709_v37  ;;  %v1947_v35 = vand.u32 4294901760, %v1664_v53  ;;  %v1949_v41 = vand.u32 4294901760, %v1675_v19 }
  0x53   :  { %v1726_v54 = vsub.f32 %v58_v1, %v128_v3  ;;  %v1226_v47 = vpack.c.bf16 %v276_v13, %v269_v24  ;;  %v1950_v18 = vand.u32 4294901760, %v1712_v57  ;;  %v395_v34 = vand.u32 4294901760, %v394_v36 }
  0x54   :  { %v402_v29 = vand.u32 4294901760, %v401_v33  ;;  %v186_v6 = vand.u32 4294901760, %v1722_v0  ;;  %v282_v52 = vsub.f32 %v1664_v53, %v1947_v35  ;;  %v289_v9 = vsub.f32 %v1675_v19, %v1949_v41 }
  0x55   :  { %1227 = vmatpush3.bf16.msra.mxu1 %v1226_v47  ;;  %v181_v1 = vsub.f32 %v1712_v57, %v1950_v18  ;;  %v1238_v3 = vpack.c.bf16 %v1503_v21, %v1499_v15  ;;  %v1955_v36 = vand.u32 4294901760, %v1679_v44  ;;  %v1958_v24 = vand.u32 4294901760, %v1688_v11 }
  0x56   :  { %v1228_v13 = vpack.c.bf16 %v402_v29, %v395_v34  ;;  %v187_v33 = vsub.f32 %v1722_v0, %v186_v6  ;;  %v283_v35 = vand.u32 4294901760, %v282_v52  ;;  %v290_v59 = vand.u32 4294901760, %v289_v9 }
  0x57   :  { %v182_v41 = vand.u32 4294901760, %v181_v1  ;;  %v408_v47 = vsub.f32 %v1679_v44, %v1955_v36  ;;  %v415_v18 = vsub.f32 %v1688_v11, %v1958_v24  ;;  %v1957_v7 = vand.u32 4294901760, %v1694_v8 }
  0x58   :  { %1229 = vmatprep.subr.bf16.mxu1 %v1228_v13  ;;  %v188_v23 = vand.u32 4294901760, %v187_v33  ;;  %v1230_v34 = vpack.c.bf16 %v290_v59, %v283_v35  ;;  %v1240_v29 = vpack.c.bf16 %v1510_v26, %v1508_v25  ;;  %v1956_v52 = vand.u32 4294901760, %v1726_v54 }
  0x59   :  { %183 = vmatprep.mubr.f32.mxu0 %v182_v41  ;;  %v409_v9 = vand.u32 4294901760, %v408_v47  ;;  %v416_v1 = vand.u32 4294901760, %v415_v18  ;;  %v296_v36 = vsub.f32 %v1694_v8, %v1957_v7  ;;  %v1242_v33 = vpack.c.bf16 %v1524_v38, %v1514_v28 }
  0x5a   :  { %189 = vmatmul.mubr.f32.vlgmr.msra.gmra.mrb[0].mxu0 %v188_v23  ;;  %1231 = vmatpush3.bf16.msra.mxu1 %v1230_v34  ;;  %v303_v13 = vsub.f32 %v1726_v54, %v1956_v52  ;;  %v1244_v41 = vpack.c.bf16 %v1531_v43, %v1528_v40  ;;  %v1246_v23 = vpack.c.bf16 %v1554_v58, %v1536_v46  ;;  %v1966_v34 = vand.u32 4294901760, %v1519_v32 }
  0x5b   :  { %1239 = vmatpush3.bf16.msra.mxu0 %v1238_v3  ;;  %v1232_v59 = vpack.c.bf16 %v416_v1, %v409_v9  ;;  %v297_v35 = vand.u32 4294901760, %v296_v36  ;;  %556 = vmatprep.mubr.f32.mxu0 %v1712_v57  ;;  %v1248_v47 = vpack.c.bf16 %v1570_v12, %v1558_v63  ;;  %v1965_v36 = vand.u32 4294901760, %v1517_v31 }
  0x5c   :  { %1241 = vmatprep.subr.bf16.mxu0 %v1240_v29  ;;  %v304_v18 = vand.u32 4294901760, %v303_v13  ;;  %v1967_v1 = vand.u32 4294901760, %v1499_v15  ;;  %v1968_v29 = vand.u32 4294901760, %v1503_v21  ;;  %v1969_v52 = vand.u32 4294901760, %v1508_v25 }
  0x5d   :  { %1233 = vmatprep.subr.bf16.mxu1 %v1232_v59  ;;  %v1300_v9 = vpack.c.bf16 %v1966_v34, %v1965_v36  ;;  %v1970_v59 = vand.u32 4294901760, %v1510_v26  ;;  %v1971_v24 = vand.u32 4294901760, %v1514_v28  ;;  %v1973_v31 = vand.u32 4294901760, %v1528_v40 }
  0x5e   :  { %v1234_v3 = vpack.c.bf16 %v304_v18, %v297_v35  ;;  %v1302_v13 = vpack.c.bf16 %v1968_v29, %v1967_v1  ;;  %v1972_v35 = vand.u32 4294901760, %v1524_v38  ;;  %v1974_v32 = vand.u32 4294901760, %v1531_v43  ;;  %v1989_v29 = vld [vmem:[#allocation13_spill] sm:$0xff] }
  0x5f   :  { %v1304_v7 = vpack.c.bf16 %v1970_v59, %v1969_v52  ;;  %1243 = vmatpush3.bf16.msra.mxu0 %v1242_v33  ;;  %v1975_v15 = vand.u32 4294901760, %v1536_v46  ;;  %v1976_v21 = vand.u32 4294901760, %v1554_v58  ;;  %v1977_v25 = vand.u32 4294901760, %v1558_v63  ;;  %v1990_v59 = vld [vmem:[#allocation14_spill] sm:$0xff] }
  0x60   :  { %v1306_v18 = vpack.c.bf16 %v1972_v35, %v1971_v24  ;;  %v1308_v36 = vpack.c.bf16 %v1974_v32, %v1973_v31  ;;  %v1978_v26 = vand.u32 4294901760, %v1570_v12  ;;  %1235 = vmatpush3.bf16.msra.mxu1 %v1234_v3  ;;  %1245 = vmatprep.subr.bf16.mxu0 %v1244_v41  ;;  %v1979_v28 = vand.u32 4294901760, %v1574_v17  ;;  %v1991_v35 = vld [vmem:[#allocation15_spill] sm:$0xff] }
  0x61   :  { %v1310_v34 = vpack.c.bf16 %v1976_v21, %v1975_v15  ;;  %v1980_v38 = vand.u32 4294901760, %v1585_v42  ;;  %v1981_v43 = vand.u32 4294901760, %v1589_v50  ;;  %v1982_v24 = vand.u32 4294901760, %v1598_v60  ;;  %1269 = vmatprep.subr.bf16.mxu1 %v1497_v14 }
  0x62   :  { %v1312_v52 = vpack.c.bf16 %v1978_v26, %v1977_v25  ;;  %v1983_v58 = vand.u32 4294901760, %v1604_v5  ;;  %v1984_v33 = vand.u32 4294901760, %v1615_v30  ;;  %v1250_v12 = vpack.c.bf16 %v1585_v42, %v1574_v17 }
  0x63   :  { %v1314_v40 = vpack.c.bf16 %v1980_v38, %v1979_v28  ;;  %v1316_v46 = vpack.c.bf16 %v1982_v24, %v1981_v43  ;;  %421 = vmatmul.mubr.f32.vlgmr.msra.gmra.mrb[0].mxu1 %v1709_v37  ;;  %1247 = vmatpush3.bf16.msra.mxu0 %v1246_v23  ;;  %v1252_v41 = vpack.c.bf16 %v1598_v60, %v1589_v50  ;;  %v1985_v3 = vand.u32 4294901760, %v1712_v57  ;;  %v1986_v57 = vld [vmem:[#allocation11_spill] sm:$0xff]  ;;  %v1987_v23 = vld [vmem:[#allocation12_spill] sm:$0xff] }
  0x64   :  { %v1318_v63 = vpack.c.bf16 %v1984_v33, %v1983_v58  ;;  %1271 = vmatpush3.bf16.msra.mxu1 %v1501_v20  ;;  %1249 = vmatprep.subr.bf16.mxu0 %v1248_v47  ;;  %v1254_v1 = vpack.c.bf16 %v1615_v30, %v1604_v5  ;;  %v1256_v17 = vpack.c.bf16 %v1628_v55, %v1619_v51  ;;  %v1988_v47 = vld [vmem:[#allocation16_spill] sm:$0xff] }
  0x65   :  { %1273 = vmatprep.subr.bf16.mxu1 %v1505_v22  ;;  %663 = vmatprep.mubr.f32.mxu1 %v1985_v3  ;;  %v1258_v42 = vpack.c.bf16 %v1645_v56, %v1634_v61  ;;  %v1260_v50 = vpack.c.bf16 %v1658_v2, %v1649_v10  ;;  %v1262_v60 = vpack.c.bf16 %v1675_v19, %v1664_v53 }
  0x66   :  { %v1264_v5 = vpack.c.bf16 %v1688_v11, %v1679_v44  ;;  %v1266_v30 = vpack.c.bf16 %v1726_v54, %v1694_v8 }
  0x67   :  { %1251 = vmatpush3.bf16.msra.mxu0 %v1250_v12 }
  0x68   :  { %1275 = vmatpush3.bf16.msra.mxu1 %v1512_v27  ;;  %1253 = vmatprep.subr.bf16.mxu0 %v1252_v41 }
  0x69   :  { %1277 = vmatprep.subr.bf16.mxu1 %v1526_v39 }
  0x6b   :  { %1255 = vmatpush3.bf16.msra.mxu0 %v1254_v1 }
  0x6c   :  { %1279 = vmatpush3.bf16.msra.mxu1 %v1534_v45  ;;  %1257 = vmatprep.subr.bf16.mxu0 %v1256_v17 }
  0x6d   :  { %1281 = vmatprep.subr.bf16.mxu1 %v1556_v62 }
  0x6f   :  { %1259 = vmatpush3.bf16.msra.mxu0 %v1258_v42 }
  0x70   :  { %1283 = vmatpush3.bf16.msra.mxu1 %v1572_v16  ;;  %1261 = vmatprep.subr.bf16.mxu0 %v1260_v50 }
  0x71   :  { %1285 = vmatprep.subr.bf16.mxu1 %v1587_v49 }
  0x73   :  { %1263 = vmatpush3.bf16.msra.mxu0 %v1262_v60 }
  0x74   :  { %1287 = vmatpush3.bf16.msra.mxu1 %v1602_v4  ;;  %1265 = vmatprep.subr.bf16.mxu0 %v1264_v5 }
  0x75   :  { %1289 = vmatprep.subr.bf16.mxu1 %v1617_v48 }
  0x77   :  { %1267 = vmatpush3.bf16.msra.mxu0 %v1266_v30 }
  0x78   :  { %1291 = vmatpush3.bf16.msra.mxu1 %v1986_v57  ;;  %1301 = vmatprep.subr.bf16.mxu0 %v1300_v9  ;;  %v1993_v9 = vand.u32 4294901760, %v1628_v55 }
  0x79   :  { %1293 = vmatprep.subr.bf16.mxu1 %v1987_v23 }
  0x7a   :  { %559 = vmatmul.mubr.f32.vlgmr.msra.gmra.mrb[2].mxu0 %v1722_v0  ;;  %v1994_v0 = vand.u32 4294901760, %v1634_v61  ;;  %v2000_v61 = vand.u32 4294901760, %v1679_v44 }
  0x7b   :  { %1303 = vmatpush3.bf16.msra.mxu0 %v1302_v13  ;;  %833 = vmatprep.mubr.f32.mxu0 %v1988_v47 }
  0x7c   :  { %1295 = vmatpush3.bf16.msra.mxu1 %v1989_v29  ;;  %1305 = vmatprep.subr.bf16.mxu0 %v1304_v7  ;;  %v1992_v7 = vand.u32 4294901760, %v1619_v51  ;;  %v1998_v51 = vand.u32 4294901760, %v1664_v53 }
  0x7d   :  { %1297 = vmatprep.subr.bf16.mxu1 %v1990_v59 }
  0x7f   :  { %1307 = vmatpush3.bf16.msra.mxu0 %v1306_v18 }
  0x80   :  { %1299 = vmatpush3.bf16.msra.mxu1 %v1991_v35  ;;  %1309 = vmatprep.subr.bf16.mxu0 %v1308_v36 }
  0x81   :  { %1333 = vmatprep.subr.bf16.mxu1 %v1497_v14  ;;  %v1320_v14 = vpack.c.bf16 %v1993_v9, %v1992_v7 }
  0x83   :  { %667 = vmatmul.mubr.f32.vlgmr.msra.gmra.mrb[2].mxu1 %v186_v6  ;;  %1311 = vmatpush3.bf16.msra.mxu0 %v1310_v34 }
  0x84   :  { %1335 = vmatpush3.bf16.msra.mxu1 %v1501_v20  ;;  %1313 = vmatprep.subr.bf16.mxu0 %v1312_v52  ;;  %v1995_v20 = vand.u32 4294901760, %v1645_v56 }
  0x85   :  { %1337 = vmatprep.subr.bf16.mxu1 %v1505_v22  ;;  %937 = vmatprep.mubr.f32.mxu1 %v1988_v47  ;;  %v1996_v22 = vand.u32 4294901760, %v1649_v10  ;;  %v2002_v10 = vand.u32 4294901760, %v1694_v8 }
  0x86   :  { %v1322_v6 = vpack.c.bf16 %v1995_v20, %v1994_v0 }
  0x87   :  { %1315 = vmatpush3.bf16.msra.mxu0 %v1314_v40 }
  0x88   :  { %1339 = vmatpush3.bf16.msra.mxu1 %v1512_v27  ;;  %1317 = vmatprep.subr.bf16.mxu0 %v1316_v46  ;;  %v1997_v27 = vand.u32 4294901760, %v1658_v2 }
  0x89   :  { %1341 = vmatprep.subr.bf16.mxu1 %v1526_v39  ;;  %v1999_v39 = vand.u32 4294901760, %v1675_v19 }
  0x8a   :  { %v1324_v13 = vpack.c.bf16 %v1997_v27, %v1996_v22 }
  0x8b   :  { %1319 = vmatpush3.bf16.msra.mxu0 %v1318_v63  ;;  %v1326_v55 = vpack.c.bf16 %v1999_v39, %v1998_v51 }
  0x8c   :  { %1343 = vmatpush3.bf16.msra.mxu1 %v1534_v45  ;;  %1321 = vmatprep.subr.bf16.mxu0 %v1320_v14  ;;  %v2001_v45 = vand.u32 4294901760, %v1688_v11 }
  0x8d   :  { %1345 = vmatprep.subr.bf16.mxu1 %v1556_v62  ;;  %v2003_v62 = vand.u32 4294901760, %v1726_v54 }
  0x8e   :  { %v1328_v56 = vpack.c.bf16 %v2001_v45, %v2000_v61 }
  0x8f   :  { %1323 = vmatpush3.bf16.msra.mxu0 %v1322_v6  ;;  %v1330_v2 = vpack.c.bf16 %v2003_v62, %v2002_v10 }
  0x90   :  { %1347 = vmatpush3.bf16.msra.mxu1 %v1572_v16  ;;  %1325 = vmatprep.subr.bf16.mxu0 %v1324_v13 }
  0x91   :  { %1349 = vmatprep.subr.bf16.mxu1 %v1587_v49  ;;  %v961_v49 = vld [vmem:[%s1912_s2] ss:$0 sm:$0xff]  ;;  %s1445_s2 = smov [#allocation7]  }
  0x92   :  { %s951_s11 = sshll.u32 %s1445_s2, 4  ;;  %s952_s11 = int_to_ptr.vmem [resolvable:$true] %s951_s11 }
  0x93   :  { %1327 = vmatpush3.bf16.msra.mxu0 %v1326_v55  ;;  %s1413_s12 = scalar_lea.vmem %s952_s11, 128  ;;  %p1418_p3 = scmp.lt.s32.totalorder %s952_s11, %s952_s11 }
  0x94   :  { %1351 = vmatpush3.bf16.msra.mxu1 %v1602_v4  ;;  %1329 = vmatprep.subr.bf16.mxu0 %v1328_v56  ;;  %p1414_p2 = scmp.ne.s32.totalorder %s952_s11, %s1413_s12  ;;  %p1419_p4 = scmp.lt.s32.totalorder %s1413_s12, %s1413_s12 }
  0x95   :  { %1353 = vmatprep.subr.bf16.mxu1 %v1617_v48 }
  0x96   :  { %p1420_p5 = por %p1419_p4, %p1418_p3 }
  0x97   :  { %1331 = vmatpush3.bf16.msra.mxu0 %v1330_v2 }
  0x98   :  { %1355 = vmatpush3.bf16.msra.mxu1 %v1986_v57  ;;  %p1421_p6 = pnand %p1420_p5, %p1414_p2 }
  0x99   :  { %1357 = vmatprep.subr.bf16.mxu1 %v1987_v23 }
  0x9a   :  { %835 = vmatmul.mubr.f32.vlgmr.msra.gmra.mrb[4].mxu0 %v1709_v37 }
  0x9c   :  { %1359 = vmatpush3.bf16.msra.mxu1 %v1989_v29 }
  0x9d   :  { %1361 = vmatprep.subr.bf16.mxu1 %v1990_v59 }
  0xa0   :  { %1363 = vmatpush3.bf16.msra.mxu1 %v1991_v35 }
  0xa3   :  { %939 = vmatmul.mubr.f32.vlgmr.msra.gmra.mrb[4].mxu1 %v1709_v37 }
 0x12d   :  { %v994_v44 = vpop.f32.mrb[0].mxu0 }
 0x12e   :  { %v995_v53 = vpop.f32.mrb[1].mxu0 }
 0x12f   :  { %v996_v16 = vadd.f32 %v995_v53, %v994_v44 }
 0x131   :  { %v191_v4 = vadd.f32 %v996_v16, %v961_v49 }
 0x136   :  { %v1029_v48 = vpop.f32.mrb[0].mxu1 }
 0x137   :  { %v1030_v8 = vpop.f32.mrb[1].mxu1 }
 0x138   :  { %v1031_v19 = vadd.f32 %v1030_v8, %v1029_v48 }
 0x13a   :  { %v423_v11 = vadd.f32 %v1031_v19, %v191_v4 }
 0x14d   :  { %v1064_v54 = vpop.f32.mrb[2].mxu0 }
 0x14e   :  { %v1065_v18 = vpop.f32.mrb[3].mxu0 }
 0x14f   :  { %v1066_v31 = vadd.f32 %v1065_v18, %v1064_v54 }
 0x151   :  { %v561_v32 = vadd.f32 %v1066_v31, %v423_v11 }
 0x156   :  { %v1099_v36 = vpop.f32.mrb[2].mxu1 }
 0x157   :  { %v1100_v15 = vpop.f32.mrb[3].mxu1 }
 0x158   :  { %v1101_v21 = vadd.f32 %v1100_v15, %v1099_v36 }
 0x15a   :  { %v669_v37 = vadd.f32 %v1101_v21, %v561_v32 }
 0x16d   :  { %v1134_v34 = vpop.f32.mrb[4].mxu0 }
 0x16e   :  { %v1135_v25 = vpop.f32.mrb[5].mxu0 }
 0x16f   :  { %v1136_v26 = vadd.f32 %v1135_v25, %v1134_v34 }
 0x171   :  { %v837_v52 = vadd.f32 %v1136_v26, %v669_v37 }
 0x176   :  { %v1169_v28 = vpop.f32.mrb[4].mxu1 }
 0x177   :  { %v1170_v38 = vpop.f32.mrb[5].mxu1 }
 0x178   :  { %v1171_v40 = vadd.f32 %v1170_v38, %v1169_v28 }
 0x17a   :  { %v941_v43 = vadd.f32 %v1171_v40, %v837_v52 }
 0x17c   :  { %944 = vst [vmem:[#allocation7] sm:$0xff] %v941_v43 }
 0x17d   :  { %1424 = shalt.err (!%p1421_p6)
}
 0x17e   :  { %s1425_s15 = scalar_lea.hbm %s1913_s3, 128 }
 0x17f   :  { %p1426_p7 = scmp.ne.s32.totalorder %s1913_s3, %s1425_s15  ;;  %p1429_p8 = scmp.lt.u32.totalorder %s1425_s15, %s1913_s3 }
 0x181   :  { %p1431_p9 = pnand %p1429_p8, %p1426_p7 }
 0x183   :  { %1434 = shalt.err (!%p1431_p9)
}
 0x184   :  { %954 = dma.vmem_to_hbm [thread:$0]  %s952_s11, 128, %s1913_s3, [#allocation4]  }
 0x185   :  { %1439 = dma.done.wait [#allocation4], 128  }
 0x186   :  { %1440 = vsyncadd [#allocation4], 4294967168 }
 0x187   :  { %958 = vsyncpa [#allocation3], 1 }
 0x188   :  { %959 = vsyncpa [#allocation6], 1 }
 0x189   :  { %960 = vsyncpa [#allocation4], 1 }

// kernel: tpu_custom_call.1
= control target key start
LH: loop header
LB: loop body
LE: loop exit
PB: predicated region body
PF: predicated region fallthrough
CT: control target
= control target key end

     0   :  { %8 = vsyncpa [#allocation3], 0  ;;  %s1910_s0 = inlined_call_operand.hbm [shape: f32[8,256], index: 0, kind: input, shape index: {}]   ;;  %s1911_s1 = inlined_call_operand.hbm [shape: f32[256,128], index: 1, kind: input, shape index: {}]   ;;  %s1912_s2 = inlined_call_operand.vmem [shape: f32[1,128], index: 2, kind: input, shape index: {}]   ;;  %s1913_s3 = inlined_call_operand.hbm [shape: f32[8,128], index: 3, kind: output, shape index: {}]  }
   0x1   :  { %9 = vsyncpa [#allocation6], 0 }
   0x2   :  { %10 = vsyncpa [#allocation4], 0  ;;  %s1441_s12 = smov [#allocation2]   ;;  %s1442_s14 = smov [#allocation5]  }
   0x3   :  { %s17_s13 = sshll.u32 %s1441_s12, 4  ;;  %s26_s15 = sshll.u32 %s1442_s14, 4  ;;  %s18_s13 = int_to_ptr.vmem [resolvable:$true] %s17_s13  ;;  %s1466_s15 = int_to_ptr.vmem [resolvable:$true] %s26_s15 }
   0x4   :  { %s1369_s18 = scalar_lea.hbm %s1910_s0, 256 }
   0x5   :  { %p1370_p0 = scmp.ne.s32.totalorder %s1910_s0, %s1369_s18  ;;  %p1373_p1 = scmp.lt.u32.totalorder %s1369_s18, %s1910_s0 }
   0x7   :  { %p1375_p2 = pnand %p1373_p1, %p1370_p0 }
   0x9   :  { %1378 = shalt.err (!%p1375_p2)
}
   0xa   :  { %s1379_s23 = scalar_lea.vmem %s18_s13, 256  ;;  %p1384_p4 = scmp.lt.s32.totalorder %s18_s13, %s18_s13 }
   0xb   :  { %p1380_p3 = scmp.ne.s32.totalorder %s18_s13, %s1379_s23  ;;  %p1385_p5 = scmp.lt.s32.totalorder %s1379_s23, %s1379_s23 }
   0xd   :  { %p1386_p6 = por %p1385_p5, %p1384_p4 }
   0xf   :  { %p1387_p7 = pnand %p1386_p6, %p1380_p3 }
  0x11   :  { %1390 = shalt.err (!%p1387_p7)
}
  0x12   :  { %20 = dma.hbm_to_vmem [thread:$0]  %s1910_s0, 256, %s18_s13, [#allocation3]  }
  0x13   :  { %s1391_s28 = scalar_lea.hbm %s1911_s1, 4096 }
  0x14   :  { %p1392_p8 = scmp.ne.s32.totalorder %s1911_s1, %s1391_s28  ;;  %p1395_p9 = scmp.lt.u32.totalorder %s1391_s28, %s1911_s1 }
  0x16   :  { %p1397_p10 = pnand %p1395_p9, %p1392_p8 }
  0x18   :  { %1400 = shalt.err (!%p1397_p10)
}
  0x19   :  { %s1401_s6 = scalar_lea.vmem %s1466_s15, 4096  ;;  %p1406_p12 = scmp.lt.s32.totalorder %s1466_s15, %s1466_s15 }
  0x1a   :  { %p1402_p11 = scmp.ne.s32.totalorder %s1466_s15, %s1401_s6  ;;  %p1407_p13 = scmp.lt.s32.totalorder %s1401_s6, %s1401_s6 }
  0x1c   :  { %p1408_p0 = por %p1407_p13, %p1406_p12 }
  0x1e   :  { %p1409_p1 = pnand %p1408_p0, %p1402_p11 }
  0x20   :  { %1412 = shalt.err (!%p1409_p1)
}
  0x21   :  { %s1443_s0 = smov 128   ;;  %s1444_s7 = smov 8  }
  0x22   :  { %32 = dma.hbm_to_vmem [thread:$0]  %s1911_s1, 4096, %s1466_s15, [#allocation6], %s1443_s0, %s1443_s0, %s1444_s7  }
  0x23   :  { %1435 = dma.done.wait [#allocation3], 256  }
  0x24   :  { %1436 = vsyncadd [#allocation3], 4294967040 }
  0x25   :  { %1437 = dma.done.wait [#allocation6], 4096  }
  0x26   :  { %1438 = vsyncadd [#allocation6], 4294963200  ;;  %v59_v0 = vld [vmem:[#allocation5 + $0x80] sm:$0xff]  ;;  %v60_v1 = vld [vmem:[#allocation5 + $0x88] sm:$0xff] }
  0x27   :  { %v43_v2 = vld [vmem:[#allocation5] sm:$0xff]  ;;  %v131_v3 = vand.u32 4294901760, %v59_v0  ;;  %v134_v4 = vand.u32 4294901760, %v60_v1  ;;  %v44_v5 = vld [vmem:[#allocation5 + $0x8] sm:$0xff]  ;;  %v61_v7 = vld [vmem:[#allocation5 + $0x90] sm:$0xff] }
  0x28   :  { %v83_v6 = vand.u32 4294901760, %v43_v2  ;;  %v62_v8 = vld [vmem:[#allocation5 + $0x98] sm:$0xff]  ;;  %v86_v9 = vand.u32 4294901760, %v44_v5  ;;  %v137_v10 = vand.u32 4294901760, %v61_v7  ;;  %v45_v12 = vld [vmem:[#allocation5 + $0x10] sm:$0xff]  ;;  %v63_v18 = vld [vmem:[#allocation5 + $0xa0] sm:$0xff] }
  0x29   :  { %v140_v11 = vand.u32 4294901760, %v62_v8  ;;  %v46_v13 = vld [vmem:[#allocation5 + $0x18] sm:$0xff]  ;;  %v1497_v14 = vpack.c.bf16 %v134_v4, %v131_v3  ;;  %v89_v16 = vand.u32 4294901760, %v45_v12  ;;  %v64_v19 = vld [vmem:[#allocation5 + $0xa8] sm:$0xff]  ;;  %v47_v23 = vld [vmem:[#allocation5 + $0x20] sm:$0xff]  ;;  %v143_v29 = vand.u32 4294901760, %v63_v18 }
  0x2a   :  { %v1499_v15 = vsub.f32 %v43_v2, %v83_v6  ;;  %v92_v17 = vand.u32 4294901760, %v46_v13  ;;  %v1501_v20 = vpack.c.bf16 %v86_v9, %v83_v6  ;;  %v1503_v21 = vsub.f32 %v44_v5, %v86_v9  ;;  %v48_v24 = vld [vmem:[#allocation5 + $0x28] sm:$0xff]  ;;  %v65_v37 = vld [vmem:[#allocation5 + $0xb0] sm:$0xff]  ;;  %v66_v42 = vld [vmem:[#allocation5 + $0xb8] sm:$0xff] }
  0x2b   :  { %v1505_v22 = vpack.c.bf16 %v140_v11, %v137_v10  ;;  %1173 = vmatprep.subr.bf16.mxu0 %v1497_v14  ;;  %v1508_v25 = vsub.f32 %v61_v7, %v137_v10  ;;  %v1510_v26 = vsub.f32 %v62_v8, %v140_v11  ;;  %v1514_v28 = vsub.f32 %v45_v12, %v89_v16  ;;  %v49_v55 = vld [vmem:[#allocation5 + $0x30] sm:$0xff]  ;;  %v50_v56 = vld [vmem:[#allocation5 + $0x38] sm:$0xff]  ;;  %v67_v5 = vld [vmem:[#allocation5 + $0xc0] sm:$0xff] }
  0x2c   :  { %v1512_v27 = vpack.c.bf16 %v92_v17, %v89_v16  ;;  %1175 = vmatpush3.bf16.msra.mxu0 %v1501_v20  ;;  %v146_v30 = vand.u32 4294901760, %v64_v19  ;;  %v1517_v31 = vsub.f32 %v59_v0, %v131_v3  ;;  %v1519_v32 = vsub.f32 %v60_v1, %v134_v4  ;;  %v68_v6 = vld [vmem:[#allocation5 + $0xc8] sm:$0xff]  ;;  %v51_v11 = vld [vmem:[#allocation5 + $0x40] sm:$0xff] }
  0x2d   :  { %1177 = vmatprep.subr.bf16.mxu0 %v1505_v22  ;;  %v95_v33 = vand.u32 4294901760, %v47_v23  ;;  %v98_v34 = vand.u32 4294901760, %v48_v24  ;;  %v1929_v35 = vand.u32 4294901760, %v1499_v15  ;;  %v1928_v36 = vand.u32 4294901760, %v1503_v21 }
  0x2e   :  { %v1524_v38 = vsub.f32 %v46_v13, %v92_v17  ;;  %v1526_v39 = vpack.c.bf16 %v146_v30, %v143_v29  ;;  %v1528_v40 = vsub.f32 %v63_v18, %v143_v29  ;;  %v1933_v41 = vand.u32 4294901760, %v1517_v31  ;;  %v52_v29 = vld [vmem:[#allocation5 + $0x48] sm:$0xff] }
  0x2f   :  { %v1531_v43 = vsub.f32 %v64_v19, %v146_v30  ;;  %v1931_v44 = vand.u32 4294901760, %v1519_v32  ;;  %v1534_v45 = vpack.c.bf16 %v98_v34, %v95_v33  ;;  %v1536_v46 = vsub.f32 %v47_v23, %v95_v33 }
  0x30   :  { %1179 = vmatpush3.bf16.msra.mxu0 %v1512_v27  ;;  %v310_v47 = vsub.f32 %v1517_v31, %v1933_v41  ;;  %v198_v48 = vsub.f32 %v1499_v15, %v1929_v35  ;;  %v205_v49 = vsub.f32 %v1503_v21, %v1928_v36  ;;  %v149_v50 = vand.u32 4294901760, %v65_v37  ;;  %v42_v41 = vld [vmem:[#allocation2 + $0x8] sm:$0xff] }
  0x31   :  { %1181 = vmatprep.subr.bf16.mxu0 %v1526_v39  ;;  %v317_v51 = vsub.f32 %v1519_v32, %v1931_v44  ;;  %v152_v52 = vand.u32 4294901760, %v66_v42  ;;  %v1926_v53 = vand.u32 4294901760, %v1508_v25  ;;  %v1924_v54 = vand.u32 4294901760, %v1510_v26 }
  0x32   :  { %v311_v57 = vand.u32 4294901760, %v310_v47  ;;  %v1554_v58 = vsub.f32 %v48_v24, %v98_v34  ;;  %v199_v59 = vand.u32 4294901760, %v198_v48  ;;  %v206_v60 = vand.u32 4294901760, %v205_v49 }
  0x33   :  { %v318_v61 = vand.u32 4294901760, %v317_v51  ;;  %v1556_v62 = vpack.c.bf16 %v152_v52, %v149_v50  ;;  %v1558_v63 = vsub.f32 %v65_v37, %v149_v50  ;;  %v324_v0 = vsub.f32 %v1508_v25, %v1926_v53 }
  0x34   :  { %1183 = vmatpush3.bf16.msra.mxu0 %v1534_v45  ;;  %v1206_v1 = vpack.c.bf16 %v206_v60, %v199_v59  ;;  %v331_v2 = vsub.f32 %v1510_v26, %v1924_v54  ;;  %v101_v3 = vand.u32 4294901760, %v49_v55  ;;  %v104_v4 = vand.u32 4294901760, %v50_v56  ;;  %v70_v59 = vld [vmem:[#allocation5 + $0xd8] sm:$0xff] }
  0x35   :  { %v1204_v7 = vpack.c.bf16 %v318_v61, %v311_v57  ;;  %1185 = vmatprep.subr.bf16.mxu0 %v1556_v62  ;;  %v325_v8 = vand.u32 4294901760, %v324_v0  ;;  %v1923_v9 = vand.u32 4294901760, %v1514_v28  ;;  %v1921_v10 = vand.u32 4294901760, %v1524_v38  ;;  %v69_v57 = vld [vmem:[#allocation5 + $0xd0] sm:$0xff]  ;;  %v74_v54 = vld [vmem:[#allocation5 + $0xf8] sm:$0xff] }
  0x36   :  { %v1570_v12 = vsub.f32 %v66_v42, %v152_v52  ;;  %v332_v13 = vand.u32 4294901760, %v331_v2  ;;  %v1572_v16 = vpack.c.bf16 %v104_v4, %v101_v3  ;;  %v1574_v17 = vsub.f32 %v49_v55, %v101_v3 }
  0x37   :  { %1205 = vmatprep.subr.bf16.mxu1 %v1204_v7  ;;  %v212_v18 = vsub.f32 %v1514_v28, %v1923_v9  ;;  %v219_v19 = vsub.f32 %v1524_v38, %v1921_v10  ;;  %v155_v23 = vand.u32 4294901760, %v67_v5  ;;  %v158_v24 = vand.u32 4294901760, %v68_v6  ;;  %v73_v9 = vld [vmem:[#allocation5 + $0xf0] sm:$0xff] }
  0x38   :  { %1207 = vmatpush3.bf16.msra.mxu1 %v1206_v1  ;;  %v1208_v30 = vpack.c.bf16 %v332_v13, %v325_v8  ;;  %1187 = vmatpush3.bf16.msra.mxu0 %v1572_v16  ;;  %v1919_v33 = vand.u32 4294901760, %v1528_v40  ;;  %v1918_v34 = vand.u32 4294901760, %v1531_v43  ;;  %v107_v37 = vand.u32 4294901760, %v51_v11  ;;  %v53_v1 = vld [vmem:[#allocation5 + $0x50] sm:$0xff] }
  0x39   :  { %v1585_v42 = vsub.f32 %v50_v56, %v104_v4  ;;  %v213_v47 = vand.u32 4294901760, %v212_v18  ;;  %v220_v48 = vand.u32 4294901760, %v219_v19  ;;  %v1587_v49 = vpack.c.bf16 %v158_v24, %v155_v23  ;;  %v54_v18 = vld [vmem:[#allocation5 + $0x58] sm:$0xff] }
  0x3a   :  { %1209 = vmatprep.subr.bf16.mxu1 %v1208_v30  ;;  %v1589_v50 = vsub.f32 %v67_v5, %v155_v23  ;;  %v338_v51 = vsub.f32 %v1528_v40, %v1919_v33  ;;  %v345_v52 = vsub.f32 %v1531_v43, %v1918_v34  ;;  %v110_v55 = vand.u32 4294901760, %v52_v29 }
  0x3b   :  { %v1210_v56 = vpack.c.bf16 %v220_v48, %v213_v47  ;;  %1189 = vmatprep.subr.bf16.mxu0 %v1587_v49  ;;  %v1598_v60 = vsub.f32 %v68_v6, %v158_v24  ;;  %v1916_v61 = vand.u32 4294901760, %v1536_v46  ;;  %v1914_v0 = vand.u32 4294901760, %v1554_v58 }
  0x3c   :  { %v339_v2 = vand.u32 4294901760, %v338_v51  ;;  %v346_v3 = vand.u32 4294901760, %v345_v52  ;;  %v1602_v4 = vpack.c.bf16 %v110_v55, %v107_v37  ;;  %v1604_v5 = vsub.f32 %v51_v11, %v107_v37 }
  0x3d   :  { %1211 = vmatpush3.bf16.msra.mxu1 %v1210_v56  ;;  %v226_v7 = vsub.f32 %v1536_v46, %v1916_v61  ;;  %v233_v6 = vsub.f32 %v1554_v58, %v1914_v0  ;;  %v161_v8 = vand.u32 4294901760, %v69_v57  ;;  %v164_v13 = vand.u32 4294901760, %v70_v59  ;;  %v72_v0 = vld [vmem:[#allocation5 + $0xe8] sm:$0xff] }
  0x3e   :  { %v1212_v19 = vpack.c.bf16 %v346_v3, %v339_v2  ;;  %1191 = vmatpush3.bf16.msra.mxu0 %v1602_v4  ;;  %v1915_v23 = vand.u32 4294901760, %v1558_v63  ;;  %v1917_v11 = vand.u32 4294901760, %v1570_v12  ;;  %v113_v24 = vand.u32 4294901760, %v53_v1  ;;  %v71_v3 = vld [vmem:[#allocation5 + $0xe0] sm:$0xff] }
  0x3f   :  { %v1615_v30 = vsub.f32 %v52_v29, %v110_v55  ;;  %v227_v37 = vand.u32 4294901760, %v226_v7  ;;  %v234_v47 = vand.u32 4294901760, %v233_v6  ;;  %v1617_v48 = vpack.c.bf16 %v164_v13, %v161_v8  ;;  %v55_v6 = vld [vmem:[#allocation5 + $0x60] sm:$0xff] }
  0x40   :  { %1213 = vmatprep.subr.bf16.mxu1 %v1212_v19  ;;  %v1619_v51 = vsub.f32 %v69_v57, %v161_v8  ;;  %v352_v52 = vsub.f32 %v1558_v63, %v1915_v23  ;;  %v359_v56 = vsub.f32 %v1570_v12, %v1917_v11  ;;  %v116_v2 = vand.u32 4294901760, %v54_v18  ;;  %v56_v11 = vld [vmem:[#allocation5 + $0x68] sm:$0xff] }
  0x41   :  { %v1214_v29 = vpack.c.bf16 %v234_v47, %v227_v37  ;;  %1193 = vmatprep.subr.bf16.mxu0 %v1617_v48  ;;  %v1628_v55 = vsub.f32 %v70_v59, %v164_v13  ;;  %v1920_v7 = vand.u32 4294901760, %v1574_v17  ;;  %v1922_v57 = vand.u32 4294901760, %v1585_v42 }
  0x42   :  { %v353_v8 = vand.u32 4294901760, %v352_v52  ;;  %v360_v19 = vand.u32 4294901760, %v359_v56  ;;  %v1632_v23 = vpack.c.bf16 %v116_v2, %v113_v24  ;;  %v1634_v61 = vsub.f32 %v53_v1, %v113_v24 }
  0x43   :  { %1215 = vmatpush3.bf16.msra.mxu1 %v1214_v29  ;;  %v240_v37 = vsub.f32 %v1574_v17, %v1920_v7  ;;  %v247_v59 = vsub.f32 %v1585_v42, %v1922_v57  ;;  %v167_v13 = vand.u32 4294901760, %v71_v3  ;;  %v170_v47 = vand.u32 4294901760, %v72_v0 }
  0x44   :  { %1959 = vst [vmem:[#allocation11_spill] sm:$0xff] %v1632_v23  ;;  %v1216_v34 = vpack.c.bf16 %v360_v19, %v353_v8  ;;  %1195 = vmatpush3.bf16.msra.mxu0 %v1632_v23  ;;  %v1925_v52 = vand.u32 4294901760, %v1589_v50  ;;  %v1927_v1 = vand.u32 4294901760, %v1598_v60  ;;  %v119_v24 = vand.u32 4294901760, %v55_v6 }
  0x45   :  { %v1645_v56 = vsub.f32 %v54_v18, %v116_v2  ;;  %v241_v29 = vand.u32 4294901760, %v240_v37  ;;  %v248_v33 = vand.u32 4294901760, %v247_v59  ;;  %v1647_v7 = vpack.c.bf16 %v170_v47, %v167_v13  ;;  %v57_v37 = vld [vmem:[#allocation5 + $0x70] sm:$0xff] }
  0x46   :  { %1217 = vmatprep.subr.bf16.mxu1 %v1216_v34  ;;  %v1649_v10 = vsub.f32 %v71_v3, %v167_v13  ;;  %v366_v8 = vsub.f32 %v1589_v50, %v1925_v52  ;;  %v373_v19 = vsub.f32 %v1598_v60, %v1927_v1  ;;  %v122_v57 = vand.u32 4294901760, %v56_v11  ;;  %v58_v1 = vld [vmem:[#allocation5 + $0x78] sm:$0xff] }
  0x47   :  { %1960 = vst [vmem:[#allocation12_spill] sm:$0xff] %v1647_v7  ;;  %v1218_v18 = vpack.c.bf16 %v248_v33, %v241_v29  ;;  %1197 = vmatprep.subr.bf16.mxu0 %v1647_v7  ;;  %v1658_v2 = vsub.f32 %v72_v0, %v170_v47  ;;  %v1930_v34 = vand.u32 4294901760, %v1604_v5  ;;  %v1932_v3 = vand.u32 4294901760, %v1615_v30 }
  0x48   :  { %v367_v59 = vand.u32 4294901760, %v366_v8  ;;  %v374_v13 = vand.u32 4294901760, %v373_v19  ;;  %v1662_v52 = vpack.c.bf16 %v122_v57, %v119_v24  ;;  %v1664_v53 = vsub.f32 %v55_v6, %v119_v24 }
  0x49   :  { %1219 = vmatpush3.bf16.msra.mxu1 %v1218_v18  ;;  %v254_v33 = vsub.f32 %v1604_v5, %v1930_v34  ;;  %v261_v0 = vsub.f32 %v1615_v30, %v1932_v3  ;;  %v173_v47 = vand.u32 4294901760, %v73_v9  ;;  %v176_v29 = vand.u32 4294901760, %v74_v54 }
  0x4a   :  { %1961 = vst [vmem:[#allocation13_spill] sm:$0xff] %v1662_v52  ;;  %v1220_v36 = vpack.c.bf16 %v374_v13, %v367_v59  ;;  %1199 = vmatpush3.bf16.msra.mxu0 %v1662_v52  ;;  %v1936_v8 = vand.u32 4294901760, %v1619_v51  ;;  %v1937_v6 = vand.u32 4294901760, %v1628_v55  ;;  %v125_v24 = vand.u32 4294901760, %v57_v37 }
  0x4b   :  { %v1675_v19 = vsub.f32 %v56_v11, %v122_v57  ;;  %v255_v18 = vand.u32 4294901760, %v254_v33  ;;  %v262_v35 = vand.u32 4294901760, %v261_v0  ;;  %v1677_v34 = vpack.c.bf16 %v176_v29, %v173_v47 }
  0x4c   :  { %1221 = vmatprep.subr.bf16.mxu1 %v1220_v36  ;;  %v1679_v44 = vsub.f32 %v73_v9, %v173_v47  ;;  %v380_v59 = vsub.f32 %v1619_v51, %v1936_v8  ;;  %v387_v13 = vsub.f32 %v1628_v55, %v1937_v6  ;;  %v128_v3 = vand.u32 4294901760, %v58_v1  ;;  %v41_v9 = vld [vmem:[#allocation2] sm:$0xff] }
  0x4d   :  { %1962 = vst [vmem:[#allocation14_spill] sm:$0xff] %v1677_v34  ;;  %v1222_v52 = vpack.c.bf16 %v262_v35, %v255_v18  ;;  %1201 = vmatprep.subr.bf16.mxu0 %v1677_v34  ;;  %v1688_v11 = vsub.f32 %v74_v54, %v176_v29  ;;  %v1938_v57 = vand.u32 4294901760, %v1634_v61  ;;  %v1939_v36 = vand.u32 4294901760, %v1645_v56 }
  0x4e   :  { %v381_v33 = vand.u32 4294901760, %v380_v59  ;;  %v388_v0 = vand.u32 4294901760, %v387_v13  ;;  %v1692_v47 = vpack.c.bf16 %v128_v3, %v125_v24  ;;  %v1694_v8 = vsub.f32 %v57_v37, %v125_v24 }
  0x4f   :  { %1223 = vmatpush3.bf16.msra.mxu1 %v1222_v52  ;;  %v268_v35 = vsub.f32 %v1634_v61, %v1938_v57  ;;  %v275_v54 = vsub.f32 %v1645_v56, %v1939_v36  ;;  %v1702_v29 = vand.u32 4294901760, %v42_v41  ;;  %v1942_v18 = vand.u32 4294901760, %v1649_v10 }
  0x50   :  { %1963 = vst [vmem:[#allocation15_spill] sm:$0xff] %v1692_v47  ;;  %v1224_v6 = vpack.c.bf16 %v388_v0, %v381_v33  ;;  %1203 = vmatpush3.bf16.msra.mxu0 %v1692_v47  ;;  %v1948_v59 = vand.u32 4294901760, %v1658_v2  ;;  %v1236_v52 = vpack.c.bf16 %v1519_v32, %v1517_v31  ;;  %v1709_v37 = vand.u32 4294901760, %v41_v9 }
  0x51   :  { %1964 = vst [vmem:[#allocation16_spill] sm:$0xff] %v1702_v29  ;;  %v269_v24 = vand.u32 4294901760, %v268_v35  ;;  %v276_v13 = vand.u32 4294901760, %v275_v54  ;;  %v1712_v57 = vsub.f32 %v42_v41, %v1702_v29  ;;  %v394_v36 = vsub.f32 %v1649_v10, %v1942_v18  ;;  %419 = vmatprep.mubr.f32.mxu1 %v1702_v29 }
  0x52   :  { %1225 = vmatprep.subr.bf16.mxu1 %v1224_v6  ;;  %v401_v33 = vsub.f32 %v1658_v2, %v1948_v59  ;;  %1237 = vmatprep.subr.bf16.mxu0 %v1236_v52  ;;  %v1722_v0 = vsub.f32 %v41_v9, %v1709_v37  ;;  %v1947_v35 = vand.u32 4294901760, %v1664_v53  ;;  %v1949_v41 = vand.u32 4294901760, %v1675_v19 }
  0x53   :  { %v1726_v54 = vsub.f32 %v58_v1, %v128_v3  ;;  %v1226_v47 = vpack.c.bf16 %v276_v13, %v269_v24  ;;  %v1950_v18 = vand.u32 4294901760, %v1712_v57  ;;  %v395_v34 = vand.u32 4294901760, %v394_v36 }
  0x54   :  { %v402_v29 = vand.u32 4294901760, %v401_v33  ;;  %v186_v6 = vand.u32 4294901760, %v1722_v0  ;;  %v282_v52 = vsub.f32 %v1664_v53, %v1947_v35  ;;  %v289_v9 = vsub.f32 %v1675_v19, %v1949_v41 }
  0x55   :  { %1227 = vmatpush3.bf16.msra.mxu1 %v1226_v47  ;;  %v181_v1 = vsub.f32 %v1712_v57, %v1950_v18  ;;  %v1238_v3 = vpack.c.bf16 %v1503_v21, %v1499_v15  ;;  %v1955_v36 = vand.u32 4294901760, %v1679_v44  ;;  %v1958_v24 = vand.u32 4294901760, %v1688_v11 }
  0x56   :  { %v1228_v13 = vpack.c.bf16 %v402_v29, %v395_v34  ;;  %v187_v33 = vsub.f32 %v1722_v0, %v186_v6  ;;  %v283_v35 = vand.u32 4294901760, %v282_v52  ;;  %v290_v59 = vand.u32 4294901760, %v289_v9 }
  0x57   :  { %v182_v41 = vand.u32 4294901760, %v181_v1  ;;  %v408_v47 = vsub.f32 %v1679_v44, %v1955_v36  ;;  %v415_v18 = vsub.f32 %v1688_v11, %v1958_v24  ;;  %v1957_v7 = vand.u32 4294901760, %v1694_v8 }
  0x58   :  { %1229 = vmatprep.subr.bf16.mxu1 %v1228_v13  ;;  %v188_v23 = vand.u32 4294901760, %v187_v33  ;;  %v1230_v34 = vpack.c.bf16 %v290_v59, %v283_v35  ;;  %v1240_v29 = vpack.c.bf16 %v1510_v26, %v1508_v25  ;;  %v1956_v52 = vand.u32 4294901760, %v1726_v54 }
  0x59   :  { %183 = vmatprep.mubr.f32.mxu0 %v182_v41  ;;  %v409_v9 = vand.u32 4294901760, %v408_v47  ;;  %v416_v1 = vand.u32 4294901760, %v415_v18  ;;  %v296_v36 = vsub.f32 %v1694_v8, %v1957_v7  ;;  %v1242_v33 = vpack.c.bf16 %v1524_v38, %v1514_v28 }
  0x5a   :  { %189 = vmatmul.mubr.f32.vlgmr.msra.gmra.mrb[0].mxu0 %v188_v23  ;;  %1231 = vmatpush3.bf16.msra.mxu1 %v1230_v34  ;;  %v303_v13 = vsub.f32 %v1726_v54, %v1956_v52  ;;  %v1244_v41 = vpack.c.bf16 %v1531_v43, %v1528_v40  ;;  %v1246_v23 = vpack.c.bf16 %v1554_v58, %v1536_v46  ;;  %v1966_v34 = vand.u32 4294901760, %v1519_v32 }
  0x5b   :  { %1239 = vmatpush3.bf16.msra.mxu0 %v1238_v3  ;;  %v1232_v59 = vpack.c.bf16 %v416_v1, %v409_v9  ;;  %v297_v35 = vand.u32 4294901760, %v296_v36  ;;  %556 = vmatprep.mubr.f32.mxu0 %v1712_v57  ;;  %v1248_v47 = vpack.c.bf16 %v1570_v12, %v1558_v63  ;;  %v1965_v36 = vand.u32 4294901760, %v1517_v31 }
  0x5c   :  { %1241 = vmatprep.subr.bf16.mxu0 %v1240_v29  ;;  %v304_v18 = vand.u32 4294901760, %v303_v13  ;;  %v1967_v1 = vand.u32 4294901760, %v1499_v15  ;;  %v1968_v29 = vand.u32 4294901760, %v1503_v21  ;;  %v1969_v52 = vand.u32 4294901760, %v1508_v25 }
  0x5d   :  { %1233 = vmatprep.subr.bf16.mxu1 %v1232_v59  ;;  %v1300_v9 = vpack.c.bf16 %v1966_v34, %v1965_v36  ;;  %v1970_v59 = vand.u32 4294901760, %v1510_v26  ;;  %v1971_v24 = vand.u32 4294901760, %v1514_v28  ;;  %v1973_v31 = vand.u32 4294901760, %v1528_v40 }
  0x5e   :  { %v1234_v3 = vpack.c.bf16 %v304_v18, %v297_v35  ;;  %v1302_v13 = vpack.c.bf16 %v1968_v29, %v1967_v1  ;;  %v1972_v35 = vand.u32 4294901760, %v1524_v38  ;;  %v1974_v32 = vand.u32 4294901760, %v1531_v43  ;;  %v1989_v29 = vld [vmem:[#allocation13_spill] sm:$0xff] }
  0x5f   :  { %v1304_v7 = vpack.c.bf16 %v1970_v59, %v1969_v52  ;;  %1243 = vmatpush3.bf16.msra.mxu0 %v1242_v33  ;;  %v1975_v15 = vand.u32 4294901760, %v1536_v46  ;;  %v1976_v21 = vand.u32 4294901760, %v1554_v58  ;;  %v1977_v25 = vand.u32 4294901760, %v1558_v63  ;;  %v1990_v59 = vld [vmem:[#allocation14_spill] sm:$0xff] }
  0x60   :  { %v1306_v18 = vpack.c.bf16 %v1972_v35, %v1971_v24  ;;  %v1308_v36 = vpack.c.bf16 %v1974_v32, %v1973_v31  ;;  %v1978_v26 = vand.u32 4294901760, %v1570_v12  ;;  %1235 = vmatpush3.bf16.msra.mxu1 %v1234_v3  ;;  %1245 = vmatprep.subr.bf16.mxu0 %v1244_v41  ;;  %v1979_v28 = vand.u32 4294901760, %v1574_v17  ;;  %v1991_v35 = vld [vmem:[#allocation15_spill] sm:$0xff] }
  0x61   :  { %v1310_v34 = vpack.c.bf16 %v1976_v21, %v1975_v15  ;;  %v1980_v38 = vand.u32 4294901760, %v1585_v42  ;;  %v1981_v43 = vand.u32 4294901760, %v1589_v50  ;;  %v1982_v24 = vand.u32 4294901760, %v1598_v60  ;;  %1269 = vmatprep.subr.bf16.mxu1 %v1497_v14 }
  0x62   :  { %v1312_v52 = vpack.c.bf16 %v1978_v26, %v1977_v25  ;;  %v1983_v58 = vand.u32 4294901760, %v1604_v5  ;;  %v1984_v33 = vand.u32 4294901760, %v1615_v30  ;;  %v1250_v12 = vpack.c.bf16 %v1585_v42, %v1574_v17 }
  0x63   :  { %v1314_v40 = vpack.c.bf16 %v1980_v38, %v1979_v28  ;;  %v1316_v46 = vpack.c.bf16 %v1982_v24, %v1981_v43  ;;  %421 = vmatmul.mubr.f32.vlgmr.msra.gmra.mrb[0].mxu1 %v1709_v37  ;;  %1247 = vmatpush3.bf16.msra.mxu0 %v1246_v23  ;;  %v1252_v41 = vpack.c.bf16 %v1598_v60, %v1589_v50  ;;  %v1985_v3 = vand.u32 4294901760, %v1712_v57  ;;  %v1986_v57 = vld [vmem:[#allocation11_spill] sm:$0xff]  ;;  %v1987_v23 = vld [vmem:[#allocation12_spill] sm:$0xff] }
  0x64   :  { %v1318_v63 = vpack.c.bf16 %v1984_v33, %v1983_v58  ;;  %1271 = vmatpush3.bf16.msra.mxu1 %v1501_v20  ;;  %1249 = vmatprep.subr.bf16.mxu0 %v1248_v47  ;;  %v1254_v1 = vpack.c.bf16 %v1615_v30, %v1604_v5  ;;  %v1256_v17 = vpack.c.bf16 %v1628_v55, %v1619_v51  ;;  %v1988_v47 = vld [vmem:[#allocation16_spill] sm:$0xff] }
  0x65   :  { %1273 = vmatprep.subr.bf16.mxu1 %v1505_v22  ;;  %663 = vmatprep.mubr.f32.mxu1 %v1985_v3  ;;  %v1258_v42 = vpack.c.bf16 %v1645_v56, %v1634_v61  ;;  %v1260_v50 = vpack.c.bf16 %v1658_v2, %v1649_v10  ;;  %v1262_v60 = vpack.c.bf16 %v1675_v19, %v1664_v53 }
  0x66   :  { %v1264_v5 = vpack.c.bf16 %v1688_v11, %v1679_v44  ;;  %v1266_v30 = vpack.c.bf16 %v1726_v54, %v1694_v8 }
  0x67   :  { %1251 = vmatpush3.bf16.msra.mxu0 %v1250_v12 }
  0x68   :  { %1275 = vmatpush3.bf16.msra.mxu1 %v1512_v27  ;;  %1253 = vmatprep.subr.bf16.mxu0 %v1252_v41 }
  0x69   :  { %1277 = vmatprep.subr.bf16.mxu1 %v1526_v39 }
  0x6b   :  { %1255 = vmatpush3.bf16.msra.mxu0 %v1254_v1 }
  0x6c   :  { %1279 = vmatpush3.bf16.msra.mxu1 %v1534_v45  ;;  %1257 = vmatprep.subr.bf16.mxu0 %v1256_v17 }
  0x6d   :  { %1281 = vmatprep.subr.bf16.mxu1 %v1556_v62 }
  0x6f   :  { %1259 = vmatpush3.bf16.msra.mxu0 %v1258_v42 }
  0x70   :  { %1283 = vmatpush3.bf16.msra.mxu1 %v1572_v16  ;;  %1261 = vmatprep.subr.bf16.mxu0 %v1260_v50 }
  0x71   :  { %1285 = vmatprep.subr.bf16.mxu1 %v1587_v49 }
  0x73   :  { %1263 = vmatpush3.bf16.msra.mxu0 %v1262_v60 }
  0x74   :  { %1287 = vmatpush3.bf16.msra.mxu1 %v1602_v4  ;;  %1265 = vmatprep.subr.bf16.mxu0 %v1264_v5 }
  0x75   :  { %1289 = vmatprep.subr.bf16.mxu1 %v1617_v48 }
  0x77   :  { %1267 = vmatpush3.bf16.msra.mxu0 %v1266_v30 }
  0x78   :  { %1291 = vmatpush3.bf16.msra.mxu1 %v1986_v57  ;;  %1301 = vmatprep.subr.bf16.mxu0 %v1300_v9  ;;  %v1993_v9 = vand.u32 4294901760, %v1628_v55 }
  0x79   :  { %1293 = vmatprep.subr.bf16.mxu1 %v1987_v23 }
  0x7a   :  { %559 = vmatmul.mubr.f32.vlgmr.msra.gmra.mrb[2].mxu0 %v1722_v0  ;;  %v1994_v0 = vand.u32 4294901760, %v1634_v61  ;;  %v2000_v61 = vand.u32 4294901760, %v1679_v44 }
  0x7b   :  { %1303 = vmatpush3.bf16.msra.mxu0 %v1302_v13  ;;  %833 = vmatprep.mubr.f32.mxu0 %v1988_v47 }
  0x7c   :  { %1295 = vmatpush3.bf16.msra.mxu1 %v1989_v29  ;;  %1305 = vmatprep.subr.bf16.mxu0 %v1304_v7  ;;  %v1992_v7 = vand.u32 4294901760, %v1619_v51  ;;  %v1998_v51 = vand.u32 4294901760, %v1664_v53 }
  0x7d   :  { %1297 = vmatprep.subr.bf16.mxu1 %v1990_v59 }
  0x7f   :  { %1307 = vmatpush3.bf16.msra.mxu0 %v1306_v18 }
  0x80   :  { %1299 = vmatpush3.bf16.msra.mxu1 %v1991_v35  ;;  %1309 = vmatprep.subr.bf16.mxu0 %v1308_v36 }
  0x81   :  { %1333 = vmatprep.subr.bf16.mxu1 %v1497_v14  ;;  %v1320_v14 = vpack.c.bf16 %v1993_v9, %v1992_v7 }
  0x83   :  { %667 = vmatmul.mubr.f32.vlgmr.msra.gmra.mrb[2].mxu1 %v186_v6  ;;  %1311 = vmatpush3.bf16.msra.mxu0 %v1310_v34 }
  0x84   :  { %1335 = vmatpush3.bf16.msra.mxu1 %v1501_v20  ;;  %1313 = vmatprep.subr.bf16.mxu0 %v1312_v52  ;;  %v1995_v20 = vand.u32 4294901760, %v1645_v56 }
  0x85   :  { %1337 = vmatprep.subr.bf16.mxu1 %v1505_v22  ;;  %937 = vmatprep.mubr.f32.mxu1 %v1988_v47  ;;  %v1996_v22 = vand.u32 4294901760, %v1649_v10  ;;  %v2002_v10 = vand.u32 4294901760, %v1694_v8 }
  0x86   :  { %v1322_v6 = vpack.c.bf16 %v1995_v20, %v1994_v0 }
  0x87   :  { %1315 = vmatpush3.bf16.msra.mxu0 %v1314_v40 }
  0x88   :  { %1339 = vmatpush3.bf16.msra.mxu1 %v1512_v27  ;;  %1317 = vmatprep.subr.bf16.mxu0 %v1316_v46  ;;  %v1997_v27 = vand.u32 4294901760, %v1658_v2 }
  0x89   :  { %1341 = vmatprep.subr.bf16.mxu1 %v1526_v39  ;;  %v1999_v39 = vand.u32 4294901760, %v1675_v19 }
  0x8a   :  { %v1324_v13 = vpack.c.bf16 %v1997_v27, %v1996_v22 }
  0x8b   :  { %1319 = vmatpush3.bf16.msra.mxu0 %v1318_v63  ;;  %v1326_v55 = vpack.c.bf16 %v1999_v39, %v1998_v51 }
  0x8c   :  { %1343 = vmatpush3.bf16.msra.mxu1 %v1534_v45  ;;  %1321 = vmatprep.subr.bf16.mxu0 %v1320_v14  ;;  %v2001_v45 = vand.u32 4294901760, %v1688_v11 }
  0x8d   :  { %1345 = vmatprep.subr.bf16.mxu1 %v1556_v62  ;;  %v2003_v62 = vand.u32 4294901760, %v1726_v54 }
  0x8e   :  { %v1328_v56 = vpack.c.bf16 %v2001_v45, %v2000_v61 }
  0x8f   :  { %1323 = vmatpush3.bf16.msra.mxu0 %v1322_v6  ;;  %v1330_v2 = vpack.c.bf16 %v2003_v62, %v2002_v10 }
  0x90   :  { %1347 = vmatpush3.bf16.msra.mxu1 %v1572_v16  ;;  %1325 = vmatprep.subr.bf16.mxu0 %v1324_v13 }
  0x91   :  { %1349 = vmatprep.subr.bf16.mxu1 %v1587_v49  ;;  %v961_v49 = vld [vmem:[%s1912_s2] ss:$0 sm:$0xff]  ;;  %s1445_s2 = smov [#allocation7]  }
  0x92   :  { %s951_s11 = sshll.u32 %s1445_s2, 4  ;;  %s952_s11 = int_to_ptr.vmem [resolvable:$true] %s951_s11 }
  0x93   :  { %1327 = vmatpush3.bf16.msra.mxu0 %v1326_v55  ;;  %s1413_s12 = scalar_lea.vmem %s952_s11, 128  ;;  %p1418_p3 = scmp.lt.s32.totalorder %s952_s11, %s952_s11 }
  0x94   :  { %1351 = vmatpush3.bf16.msra.mxu1 %v1602_v4  ;;  %1329 = vmatprep.subr.bf16.mxu0 %v1328_v56  ;;  %p1414_p2 = scmp.ne.s32.totalorder %s952_s11, %s1413_s12  ;;  %p1419_p4 = scmp.lt.s32.totalorder %s1413_s12, %s1413_s12 }
  0x95   :  { %1353 = vmatprep.subr.bf16.mxu1 %v1617_v48 }
  0x96   :  { %p1420_p5 = por %p1419_p4, %p1418_p3 }
  0x97   :  { %1331 = vmatpush3.bf16.msra.mxu0 %v1330_v2 }
  0x98   :  { %1355 = vmatpush3.bf16.msra.mxu1 %v1986_v57  ;;  %p1421_p6 = pnand %p1420_p5, %p1414_p2 }
  0x99   :  { %1357 = vmatprep.subr.bf16.mxu1 %v1987_v23 }
  0x9a   :  { %835 = vmatmul.mubr.f32.vlgmr.msra.gmra.mrb[4].mxu0 %v1709_v37 }
  0x9c   :  { %1359 = vmatpush3.bf16.msra.mxu1 %v1989_v29 }
  0x9d   :  { %1361 = vmatprep.subr.bf16.mxu1 %v1990_v59 }
  0xa0   :  { %1363 = vmatpush3.bf16.msra.mxu1 %v1991_v35 }
  0xa3   :  { %939 = vmatmul.mubr.f32.vlgmr.msra.gmra.mrb[4].mxu1 %v1709_v37 }
 0x12d   :  { %v994_v44 = vpop.f32.mrb[0].mxu0 }
 0x12e   :  { %v995_v53 = vpop.f32.mrb[1].mxu0 }
 0x12f   :  { %v996_v16 = vadd.f32 %v995_v53, %v994_v44 }
 0x131   :  { %v191_v4 = vadd.f32 %v996_v16, %v961_v49 }
 0x136   :  { %v1029_v48 = vpop.f32.mrb[0].mxu1 }
 0x137   :  { %v1030_v8 = vpop.f32.mrb[1].mxu1 }
 0x138   :  { %v1031_v19 = vadd.f32 %v1030_v8, %v1029_v48 }
 0x13a   :  { %v423_v11 = vadd.f32 %v1031_v19, %v191_v4 }
 0x14d   :  { %v1064_v54 = vpop.f32.mrb[2].mxu0 }
 0x14e   :  { %v1065_v18 = vpop.f32.mrb[3].mxu0 }
 0x14f   :  { %v1066_v31 = vadd.f32 %v1065_v18, %v1064_v54 }
 0x151   :  { %v561_v32 = vadd.f32 %v1066_v31, %v423_v11 }
 0x156   :  { %v1099_v36 = vpop.f32.mrb[2].mxu1 }
 0x157   :  { %v1100_v15 = vpop.f32.mrb[3].mxu1 }
 0x158   :  { %v1101_v21 = vadd.f32 %v1100_v15, %v1099_v36 }
 0x15a   :  { %v669_v37 = vadd.f32 %v1101_v21, %v561_v32 }
 0x16d   :  { %v1134_v34 = vpop.f32.mrb[4].mxu0 }
 0x16e   :  { %v1135_v25 = vpop.f32.mrb[5].mxu0 }
 0x16f   :  { %v1136_v26 = vadd.f32 %v1135_v25, %v1134_v34 }
 0x171   :  { %v837_v52 = vadd.f32 %v1136_v26, %v669_v37 }
 0x176   :  { %v1169_v28 = vpop.f32.mrb[4].mxu1 }
 0x177   :  { %v1170_v38 = vpop.f32.mrb[5].mxu1 }
 0x178   :  { %v1171_v40 = vadd.f32 %v1170_v38, %v1169_v28 }
 0x17a   :  { %v941_v43 = vadd.f32 %v1171_v40, %v837_v52 }
 0x17c   :  { %944 = vst [vmem:[#allocation7] sm:$0xff] %v941_v43 }
 0x17d   :  { %1424 = shalt.err (!%p1421_p6)
}
 0x17e   :  { %s1425_s15 = scalar_lea.hbm %s1913_s3, 128 }
 0x17f   :  { %p1426_p7 = scmp.ne.s32.totalorder %s1913_s3, %s1425_s15  ;;  %p1429_p8 = scmp.lt.u32.totalorder %s1425_s15, %s1913_s3 }
 0x181   :  { %p1431_p9 = pnand %p1429_p8, %p1426_p7 }
 0x183   :  { %1434 = shalt.err (!%p1431_p9)
}
 0x184   :  { %954 = dma.vmem_to_hbm [thread:$0]  %s952_s11, 128, %s1913_s3, [#allocation4]  }
 0x185   :  { %1439 = dma.done.wait [#allocation4], 128  }
 0x186   :  { %1440 = vsyncadd [#allocation4], 4294967168 }
 0x187   :  { %958 = vsyncpa [#allocation3], 1 }
 0x188   :  { %959 = vsyncpa [#allocation6], 1 }
 0x189   :  { %960 = vsyncpa [#allocation4], 1 }

</bundles_post_ra>
